<compile_context>
chip_gen: v6e
topology: v6e:2x2x1
jax: 0.10.0
libtpu: 0.0.40
codegen_flags: <defaults>
</compile_context>

<pallas_src>
import jax
import jax.numpy as jnp
from jax import lax
from jax.experimental import pallas as pl
from jax.experimental.pallas import tpu as pltpu


def _lstm_last_kernel(nwords_ref, x_ref, wih_ref, whh_ref, b_ref, o_ref, pg_ref):
    """One tile of TILE_N independent sequences.

    nwords_ref : [TN, 1]  int32    words per sequence (0 => not a query)
    x_ref      : [W, TN, Dp] bf16  time-major embedded words (D zero-padded)
    wih_ref    : [Dp, 4Dp] bf16    fused input->hidden weights (gate-blocked cols)
    whh_ref    : [Dp, 4Dp] bf16    fused hidden->hidden weights
    b_ref      : [1, 4Dp]  f32     fused bias (b_ih + b_hh)
    o_ref      : [TN, Dp]  f32     masked last-valid hidden state
    pg_ref     : [W, TN, 4Dp] bf16 scratch: input projections (pre-gates, no bias)
    """
    W, TN, Dp = x_ref.shape
    G = 4 * Dp

    # ---- Phase 1: one big input-projection GEMM (no dependence on h) --------
    # (W, TN, Dp) -> (W*TN, Dp) is layout-free because TN is a multiple of 8.
    x_all = x_ref[...].reshape(W * TN, Dp)                          # bf16
    pg = jnp.dot(x_all, wih_ref[...], preferred_element_type=jnp.float32)
    pg_ref[...] = pg.astype(jnp.bfloat16).reshape(W, TN, G)

    n_words = nwords_ref[...]                                       # [TN, 1] i32
    lengths = jnp.maximum(n_words, 1)                               # clamp(min=1)
    bias = b_ref[...]                                               # [1, 4Dp] f32

    def sigm(z):
        # sigmoid(z) == 0.5*tanh(0.5*z) + 0.5 : one EUP op instead of exp+recip.
        return 0.5 * jnp.tanh(0.5 * z) + 0.5

    def step(t, carry):
        h, c = carry
        hb = h.astype(jnp.bfloat16)
        # Single fused recurrent GEMM per step: [TN, Dp] @ [Dp, 4Dp].
        rec = jnp.dot(hb, whh_ref[...], preferred_element_type=jnp.float32)
        gates = pg_ref[t].astype(jnp.float32) + rec + bias          # [TN, 4Dp] f32
        # Lane-aligned gate slices (Dp is a multiple of 128): gate order i,f,g,o.
        i = sigm(gates[:, :Dp])
        f = sigm(gates[:, Dp:2 * Dp])
        g = jnp.tanh(gates[:, 2 * Dp:3 * Dp])
        o = sigm(gates[:, 3 * Dp:])
        c_new = f * c + i * g
        h_new = o * jnp.tanh(c_new)
        # pack_padded_sequence semantics: freeze state once t >= length.
        valid = t < lengths                                         # [TN, 1] bool
        h = jnp.where(valid, h_new, h)
        c = jnp.where(valid, c_new, c)
        return h, c

    h0 = jnp.zeros((TN, Dp), jnp.float32)
    c0 = jnp.zeros((TN, Dp), jnp.float32)
    # Full unroll only for short sequences; longer W would blow live ranges.
    h, _ = lax.fori_loop(0, W, step, (h0, c0), unroll=(W <= 8))

    # masked_fill(~is_query, 0)
    o_ref[...] = jnp.where(n_words > 0, h, 0.0).astype(o_ref.dtype)


def _fuse_gate_weights(wmat, D, Dp):
    """PyTorch [4D, D] gate-stacked weights -> fused [Dp, 4Dp] bf16 for row @ W."""
    g = wmat.reshape(4, D, D)                       # [gate, out, in]
    g = jnp.transpose(g, (0, 2, 1))                 # [gate, in, out]  (x @ Wg)
    g = jnp.pad(g, ((0, 0), (0, Dp - D), (0, Dp - D)))
    g = jnp.transpose(g, (1, 0, 2)).reshape(Dp, 4 * Dp)   # concat gates along cols
    return g.astype(jnp.bfloat16)


def _fuse_gate_bias(b_ih, b_hh, D, Dp):
    b = (b_ih + b_hh).reshape(4, D)
    b = jnp.pad(b, ((0, 0), (0, Dp - D)))
    return b.reshape(1, 4 * Dp).astype(jnp.float32)


def textual_branch_forward(queries, embedding, w_ih, w_hh, b_ih, b_hh):
    """queries: int32 [b, q, w] word ids (0 = pad). Returns f32 [b, q, D]."""
    b, q, w = queries.shape
    D = embedding.shape[1]
    N = b * q
    Dp = ((D + 127) // 128) * 128                   # lane-dense hidden dim

    # ---- plain-XLA glue: masks / counts / embedding gather -------------------
    is_word = queries != 0
    n_words = jnp.sum(is_word, axis=-1).astype(jnp.int32).reshape(N, 1)   # [N,1]

    # TODO(synk): the data-dependent embedding gather stays in XLA glue.
    emb = embedding[queries.reshape(N, w)]                                # [N,w,D]
    x = jnp.transpose(emb, (1, 0, 2))                                     # [w,N,D]

    # ---- chip-aware tiling of the (embarrassingly parallel) sequence axis ----
    kind = ""
    try:
        kind = jax.devices()[0].device_kind.lower()
    except Exception:
        pass
    is_v7 = "7" in kind                         # v7x: 64 MiB VMEM, 2 TCs/chip
    big_vmem = ("v5" in kind) or ("v6" in kind)  # 128 MiB physical VMEM

    if N >= 128:
        tile_n = 256 if (big_vmem and not is_v7 and N >= 256) else 128
    else:
        tile_n = ((N + 7) // 8) * 8
    # v7x: guarantee >=2 grid tiles so both TensorCores get work.
    if is_v7 and tile_n > 8 and pl.cdiv(N, tile_n) < 2:
        tile_n = max(8, ((tile_n // 2 + 7) // 8) * 8)

    n_pad = pl.cdiv(N, tile_n) * tile_n
    x = jnp.pad(x, ((0, 0), (0, n_pad - N), (0, Dp - D))).astype(jnp.bfloat16)
    if n_pad != N:
        n_words = jnp.pad(n_words, ((0, n_pad - N), (0, 0)))

    # ---- fused, padded, gate-blocked weights (PyTorch gate order i, f, g, o) --
    wih4 = _fuse_gate_weights(w_ih, D, Dp)          # [Dp, 4Dp] bf16
    whh4 = _fuse_gate_weights(w_hh, D, Dp)          # [Dp, 4Dp] bf16
    bias4 = _fuse_gate_bias(b_ih, b_hh, D, Dp)      # [1, 4Dp]  f32

    # ---- accurate VMEM budget (double-buffered inputs/outputs + scratch + temps)
    G = 4 * Dp
    bytes_x = 2 * w * tile_n * Dp * 2               # x block, bf16, 2 bufs
    bytes_w = 2 * 2 * Dp * G * 2                    # wih + whh, bf16, 2 bufs each
    bytes_b = 2 * 8 * G * 4                         # bias (sublane-padded), 2 bufs
    bytes_nw = 2 * tile_n * 128 * 4                 # n_words (lane-padded), 2 bufs
    bytes_out = 2 * tile_n * Dp * 4                 # output block, f32, 2 bufs
    bytes_pg = w * tile_n * G * 2                   # bf16 pre-gate scratch
    bytes_tmp = w * tile_n * G * 4 + 8 * tile_n * G * 4  # phase-1 f32 result + step temps
    need = bytes_x + bytes_w + bytes_b + bytes_nw + bytes_out + bytes_pg + bytes_tmp
    cap = (96 if big_vmem else 48) * 1024 * 1024    # stay below physical VMEM
    vmem_bytes = int(min(cap, max(32 * 1024 * 1024, int(need * 1.5))))

    out = pl.pallas_call(
        _lstm_last_kernel,
        out_shape=jax.ShapeDtypeStruct((n_pad, Dp), jnp.float32),
        grid=(n_pad // tile_n,),
        in_specs=[
            pl.BlockSpec((tile_n, 1), lambda i: (i, 0)),          # n_words
            pl.BlockSpec((w, tile_n, Dp), lambda i: (0, i, 0)),   # x (bf16)
            pl.BlockSpec((Dp, G), lambda i: (0, 0)),              # W_ih fused (resident)
            pl.BlockSpec((Dp, G), lambda i: (0, 0)),              # W_hh fused (resident)
            pl.BlockSpec((1, G), lambda i: (0, 0)),               # bias (resident)
        ],
        out_specs=pl.BlockSpec((tile_n, Dp), lambda i: (i, 0)),
        scratch_shapes=[pltpu.VMEM((w, tile_n, G), jnp.bfloat16)],
        compiler_params=pltpu.CompilerParams(
            dimension_semantics=("parallel",),
            vmem_limit_bytes=vmem_bytes,
        ),
    )(n_words, x, wih4, whh4, bias4)

    return out[:N, :D].reshape(b, q, D)


def reference_forward(queries, embedding, w_ih, w_hh, b_ih, b_hh):
    """Pure-JAX f32 reference mirroring the PyTorch forward (for validation)."""
    b, q, w = queries.shape
    D = embedding.shape[1]
    N = b * q
    is_word = queries != 0
    is_query = jnp.any(is_word, axis=-1)
    lengths = jnp.maximum(jnp.sum(is_word, axis=-1).reshape(-1), 1)
    emb = embedding[queries.reshape(N, w)]
    x = jnp.transpose(emb, (1, 0, 2)).astype(jnp.float32)
    step_mask = jnp.arange(w)[:, None] < lengths[None, :]

    def step(carry, inp):
        h, c = carry
        x_t, m_t = inp
        gates = x_t @ w_ih.T + h @ w_hh.T + b_ih + b_hh
        i, f, g, o = jnp.split(gates, 4, axis=-1)
        i, f, o = jax.nn.sigmoid(i), jax.nn.sigmoid(f), jax.nn.sigmoid(o)
        g = jnp.tanh(g)
        c_new = f * c + i * g
        h_new = o * jnp.tanh(c_new)
        m = m_t[:, None]
        return (jnp.where(m, h_new, h), jnp.where(m, c_new, c)), None

    init = (jnp.zeros((N, D), jnp.float32), jnp.zeros((N, D), jnp.float32))
    (h, _), _ = jax.lax.scan(step, init, (x, step_mask))
    h = h * is_query.reshape(N, 1).astype(jnp.float32)
    return h.reshape(b, q, D)


if __name__ == "__main__":
    # Small shapes consistent with the module (hidden=32 instead of 300 for test).
    b, q, w = 2, 4, 8
    vocab, D = 50, 32

    key = jax.random.PRNGKey(0)
    k_emb, k_wih, k_whh, k_bih, k_bhh, k_qry = jax.random.split(key, 6)

    embedding = jax.random.normal(k_emb, (vocab, D), jnp.float32) * 0.1
    w_ih = jax.random.normal(k_wih, (4 * D, D), jnp.float32) * 0.1   # gate order i,f,g,o
    w_hh = jax.random.normal(k_whh, (4 * D, D), jnp.float32) * 0.1
    b_ih = jax.random.normal(k_bih, (4 * D,), jnp.float32) * 0.1
    b_hh = jax.random.normal(k_bhh, (4 * D,), jnp.float32) * 0.1

    # Queries with variable word counts; one query is all-padding.
    queries = jax.random.randint(k_qry, (b, q, w), 1, vocab, dtype=jnp.int32)
    words_per_query = jnp.array([[5, 3, 8, 0], [2, 7, 1, 4]], dtype=jnp.int32)
    word_valid = jnp.arange(w)[None, None, :] < words_per_query[:, :, None]
    queries = jnp.where(word_valid, queries, 0)

    out = textual_branch_forward(queries, embedding, w_ih, w_hh, b_ih, b_hh)
    out = jax.block_until_ready(out)

    ref = reference_forward(queries, embedding, w_ih, w_hh, b_ih, b_hh)
    assert out.shape == (b, q, D)
    # bf16 matmul operands + bf16 pre-gate scratch (f32 accumulation) vs f32 ref.
    assert jnp.allclose(out, ref, atol=2e-2, rtol=2e-2)

    print("KERNEL_OK")
</pallas_src>

<mosaic_0001>
module attributes {stable_mosaic.version = 11 : i64} {
  func.func @_lstm_last_kernel(%arg0: i32, %arg1: memref<8x1xi32, #tpu.memory_space<vmem>>, %arg2: memref<8x8x128xbf16, #tpu.memory_space<vmem>>, %arg3: memref<128x512xbf16, #tpu.memory_space<vmem>>, %arg4: memref<128x512xbf16, #tpu.memory_space<vmem>>, %arg5: memref<1x512xf32, #tpu.memory_space<vmem>>, %arg6: memref<8x128xf32, #tpu.memory_space<vmem>>, %arg7: memref<8x8x512xbf16, #tpu.memory_space<vmem>>) attributes {dimension_semantics = [#tpu.dimension_semantics<parallel>], iteration_bounds = array<i64: 1>, scalar_prefetch = 0 : i64, scratch_operands = 1 : i64, tpu.core_type = #tpu.core_type<tc>, window_params = [{transform_indices = @transform_0, window_bounds = array<i64: 8, 1>}, {transform_indices = @transform_1, window_bounds = array<i64: 8, 8, 128>}, {pipeline_mode = #tpu.pipeline_mode<synchronous>, transform_indices = @transform_2, window_bounds = array<i64: 128, 512>}, {pipeline_mode = #tpu.pipeline_mode<synchronous>, transform_indices = @transform_3, window_bounds = array<i64: 128, 512>}, {pipeline_mode = #tpu.pipeline_mode<synchronous>, transform_indices = @transform_4, window_bounds = array<i64: 1, 512>}, {transform_indices = @transform_5, window_bounds = array<i64: 8, 128>}]} {
    %c0 = arith.constant 0 : index
    %c0_0 = arith.constant 0 : index
    %c0_1 = arith.constant 0 : index
    %0 = vector.load %arg2[%c0, %c0_0, %c0_1] : memref<8x8x128xbf16, #tpu.memory_space<vmem>>, vector<8x8x128xbf16>
    %1 = vector.shape_cast %0 : vector<8x8x128xbf16> to vector<64x128xbf16>
    %c0_2 = arith.constant 0 : index
    %c0_3 = arith.constant 0 : index
    %2 = vector.load %arg3[%c0_2, %c0_3] : memref<128x512xbf16, #tpu.memory_space<vmem>>, vector<128x512xbf16>
    %cst = arith.constant dense<0.000000e+00> : vector<64x512xf32>
    %3 = tpu.matmul %1, %2, %cst {dimension_numbers = #tpu.dot_dimension_numbers<[1], [0], [0], [1], [0, 0, 1, 1], [], []>} : vector<64x128xbf16>, vector<128x512xbf16>, vector<64x512xf32> -> vector<64x512xf32>
    %4 = arith.truncf %3 : vector<64x512xf32> to vector<64x512xbf16>
    %5 = vector.shape_cast %4 : vector<64x512xbf16> to vector<8x8x512xbf16>
    %c0_4 = arith.constant 0 : index
    %c0_5 = arith.constant 0 : index
    %c0_6 = arith.constant 0 : index
    %6 = vector.load %arg7[%c0_4, %c0_5, %c0_6] : memref<8x8x512xbf16, #tpu.memory_space<vmem>>, vector<8x8x512xbf16>
    tpu.vector_store %arg7[%c0_4, %c0_5, %c0_6], %5 {strides = array<i32>} : memref<8x8x512xbf16, #tpu.memory_space<vmem>>, vector<8x8x512xbf16>,
    %c0_7 = arith.constant 0 : index
    %c0_8 = arith.constant 0 : index
    %7 = vector.load %arg1[%c0_7, %c0_8] : memref<8x1xi32, #tpu.memory_space<vmem>>, vector<8x1xi32>
    %c1_i32 = arith.constant 1 : i32
    %8 = vector.broadcast %c1_i32 : i32 to vector<8x1xi32>
    %9 = arith.maxsi %7, %8 : vector<8x1xi32>
    %c0_9 = arith.constant 0 : index
    %c0_10 = arith.constant 0 : index
    %10 = vector.load %arg5[%c0_9, %c0_10] : memref<1x512xf32, #tpu.memory_space<vmem>>, vector<1x512xf32>
    %cst_11 = arith.constant 0.000000e+00 : f32
    %11 = vector.broadcast %cst_11 : f32 to vector<8x128xf32>
    %cst_12 = arith.constant 0.000000e+00 : f32
    %12 = vector.broadcast %cst_12 : f32 to vector<8x128xf32>
    %c0_i32 = arith.constant 0 : i32
    %13 = arith.truncf %11 : vector<8x128xf32> to vector<8x128xbf16>
    %c0_13 = arith.constant 0 : index
    %c0_14 = arith.constant 0 : index
    %14 = vector.load %arg4[%c0_13, %c0_14] : memref<128x512xbf16, #tpu.memory_space<vmem>>, vector<128x512xbf16>
    %cst_15 = arith.constant dense<0.000000e+00> : vector<8x512xf32>
    %15 = tpu.matmul %13, %14, %cst_15 {dimension_numbers = #tpu.dot_dimension_numbers<[1], [0], [0], [1], [0, 0, 1, 1], [], []>} : vector<8x128xbf16>, vector<128x512xbf16>, vector<8x512xf32> -> vector<8x512xf32>
    %16 = arith.index_cast %c0_i32 : i32 to index
    %c0_16 = arith.constant 0 : index
    %c0_17 = arith.constant 0 : index
    %17 = vector.load %arg7[%16, %c0_16, %c0_17] : memref<8x8x512xbf16, #tpu.memory_space<vmem>>, vector<1x8x512xbf16>
    %18 = vector.shape_cast %17 : vector<1x8x512xbf16> to vector<8x512xbf16>
    %19 = arith.extf %18 : vector<8x512xbf16> to vector<8x512xf32>
    %20 = arith.addf %19, %15 : vector<8x512xf32>
    %21 = vector.broadcast %10 : vector<1x512xf32> to vector<8x512xf32>
    %22 = arith.addf %20, %21 : vector<8x512xf32>
    %23 = vector.extract_strided_slice %22 {offsets = [0, 0], sizes = [8, 128], strides = [1, 1]} : vector<8x512xf32> to vector<8x128xf32>
    %cst_18 = arith.constant 5.000000e-01 : f32
    %24 = vector.broadcast %cst_18 : f32 to vector<8x128xf32>
    %25 = arith.mulf %24, %23 : vector<8x128xf32>
    %26 = math.tanh %25 : vector<8x128xf32>
    %cst_19 = arith.constant 5.000000e-01 : f32
    %27 = vector.broadcast %cst_19 : f32 to vector<8x128xf32>
    %28 = arith.mulf %27, %26 : vector<8x128xf32>
    %cst_20 = arith.constant 5.000000e-01 : f32
    %29 = vector.broadcast %cst_20 : f32 to vector<8x128xf32>
    %30 = arith.addf %28, %29 : vector<8x128xf32>
    %31 = vector.extract_strided_slice %22 {offsets = [0, 128], sizes = [8, 128], strides = [1, 1]} : vector<8x512xf32> to vector<8x128xf32>
    %cst_21 = arith.constant 5.000000e-01 : f32
    %32 = vector.broadcast %cst_21 : f32 to vector<8x128xf32>
    %33 = arith.mulf %32, %31 : vector<8x128xf32>
    %34 = math.tanh %33 : vector<8x128xf32>
    %cst_22 = arith.constant 5.000000e-01 : f32
    %35 = vector.broadcast %cst_22 : f32 to vector<8x128xf32>
    %36 = arith.mulf %35, %34 : vector<8x128xf32>
    %cst_23 = arith.constant 5.000000e-01 : f32
    %37 = vector.broadcast %cst_23 : f32 to vector<8x128xf32>
    %38 = arith.addf %36, %37 : vector<8x128xf32>
    %39 = vector.extract_strided_slice %22 {offsets = [0, 256], sizes = [8, 128], strides = [1, 1]} : vector<8x512xf32> to vector<8x128xf32>
    %40 = math.tanh %39 : vector<8x128xf32>
    %41 = vector.extract_strided_slice %22 {offsets = [0, 384], sizes = [8, 128], strides = [1, 1]} : vector<8x512xf32> to vector<8x128xf32>
    %cst_24 = arith.constant 5.000000e-01 : f32
    %42 = vector.broadcast %cst_24 : f32 to vector<8x128xf32>
    %43 = arith.mulf %42, %41 : vector<8x128xf32>
    %44 = math.tanh %43 : vector<8x128xf32>
    %cst_25 = arith.constant 5.000000e-01 : f32
    %45 = vector.broadcast %cst_25 : f32 to vector<8x128xf32>
    %46 = arith.mulf %45, %44 : vector<8x128xf32>
    %cst_26 = arith.constant 5.000000e-01 : f32
    %47 = vector.broadcast %cst_26 : f32 to vector<8x128xf32>
    %48 = arith.addf %46, %47 : vector<8x128xf32>
    %49 = arith.mulf %38, %12 : vector<8x128xf32>
    %50 = arith.mulf %30, %40 : vector<8x128xf32>
    %51 = arith.addf %49, %50 : vector<8x128xf32>
    %52 = math.tanh %51 : vector<8x128xf32>
    %53 = arith.mulf %48, %52 : vector<8x128xf32>
    %54 = vector.broadcast %c0_i32 : i32 to vector<8x1xi32>
    %55 = arith.cmpi slt, %54, %9 : vector<8x1xi32>
    %56 = vector.shape_cast %55 : vector<8x1xi1> to vector<8x1xi1>
    %57 = vector.broadcast %56 : vector<8x1xi1> to vector<8x128xi1>
    %58 = arith.select %57, %53, %11 : vector<8x128xi1>, vector<8x128xf32>
    %59 = vector.shape_cast %55 : vector<8x1xi1> to vector<8x1xi1>
    %60 = vector.broadcast %59 : vector<8x1xi1> to vector<8x128xi1>
    %61 = arith.select %60, %51, %12 : vector<8x128xi1>, vector<8x128xf32>
    %c1_i32_27 = arith.constant 1 : i32
    %62 = arith.truncf %58 : vector<8x128xf32> to vector<8x128xbf16>
    %c0_28 = arith.constant 0 : index
    %c0_29 = arith.constant 0 : index
    %63 = vector.load %arg4[%c0_28, %c0_29] : memref<128x512xbf16, #tpu.memory_space<vmem>>, vector<128x512xbf16>
    %cst_30 = arith.constant dense<0.000000e+00> : vector<8x512xf32>
    %64 = tpu.matmul %62, %63, %cst_30 {dimension_numbers = #tpu.dot_dimension_numbers<[1], [0], [0], [1], [0, 0, 1, 1], [], []>} : vector<8x128xbf16>, vector<128x512xbf16>, vector<8x512xf32> -> vector<8x512xf32>
    %65 = arith.index_cast %c1_i32_27 : i32 to index
    %c0_31 = arith.constant 0 : index
    %c0_32 = arith.constant 0 : index
    %66 = vector.load %arg7[%65, %c0_31, %c0_32] : memref<8x8x512xbf16, #tpu.memory_space<vmem>>, vector<1x8x512xbf16>
    %67 = vector.shape_cast %66 : vector<1x8x512xbf16> to vector<8x512xbf16>
    %68 = arith.extf %67 : vector<8x512xbf16> to vector<8x512xf32>
    %69 = arith.addf %68, %64 : vector<8x512xf32>
    %70 = vector.broadcast %10 : vector<1x512xf32> to vector<8x512xf32>
    %71 = arith.addf %69, %70 : vector<8x512xf32>
    %72 = vector.extract_strided_slice %71 {offsets = [0, 0], sizes = [8, 128], strides = [1, 1]} : vector<8x512xf32> to vector<8x128xf32>
    %cst_33 = arith.constant 5.000000e-01 : f32
    %73 = vector.broadcast %cst_33 : f32 to vector<8x128xf32>
    %74 = arith.mulf %73, %72 : vector<8x128xf32>
    %75 = math.tanh %74 : vector<8x128xf32>
    %cst_34 = arith.constant 5.000000e-01 : f32
    %76 = vector.broadcast %cst_34 : f32 to vector<8x128xf32>
    %77 = arith.mulf %76, %75 : vector<8x128xf32>
    %cst_35 = arith.constant 5.000000e-01 : f32
    %78 = vector.broadcast %cst_35 : f32 to vector<8x128xf32>
    %79 = arith.addf %77, %78 : vector<8x128xf32>
    %80 = vector.extract_strided_slice %71 {offsets = [0, 128], sizes = [8, 128], strides = [1, 1]} : vector<8x512xf32> to vector<8x128xf32>
    %cst_36 = arith.constant 5.000000e-01 : f32
    %81 = vector.broadcast %cst_36 : f32 to vector<8x128xf32>
    %82 = arith.mulf %81, %80 : vector<8x128xf32>
    %83 = math.tanh %82 : vector<8x128xf32>
    %cst_37 = arith.constant 5.000000e-01 : f32
    %84 = vector.broadcast %cst_37 : f32 to vector<8x128xf32>
    %85 = arith.mulf %84, %83 : vector<8x128xf32>
    %cst_38 = arith.constant 5.000000e-01 : f32
    %86 = vector.broadcast %cst_38 : f32 to vector<8x128xf32>
    %87 = arith.addf %85, %86 : vector<8x128xf32>
    %88 = vector.extract_strided_slice %71 {offsets = [0, 256], sizes = [8, 128], strides = [1, 1]} : vector<8x512xf32> to vector<8x128xf32>
    %89 = math.tanh %88 : vector<8x128xf32>
    %90 = vector.extract_strided_slice %71 {offsets = [0, 384], sizes = [8, 128], strides = [1, 1]} : vector<8x512xf32> to vector<8x128xf32>
    %cst_39 = arith.constant 5.000000e-01 : f32
    %91 = vector.broadcast %cst_39 : f32 to vector<8x128xf32>
    %92 = arith.mulf %91, %90 : vector<8x128xf32>
    %93 = math.tanh %92 : vector<8x128xf32>
    %cst_40 = arith.constant 5.000000e-01 : f32
    %94 = vector.broadcast %cst_40 : f32 to vector<8x128xf32>
    %95 = arith.mulf %94, %93 : vector<8x128xf32>
    %cst_41 = arith.constant 5.000000e-01 : f32
    %96 = vector.broadcast %cst_41 : f32 to vector<8x128xf32>
    %97 = arith.addf %95, %96 : vector<8x128xf32>
    %98 = arith.mulf %87, %61 : vector<8x128xf32>
    %99 = arith.mulf %79, %89 : vector<8x128xf32>
    %100 = arith.addf %98, %99 : vector<8x128xf32>
    %101 = math.tanh %100 : vector<8x128xf32>
    %102 = arith.mulf %97, %101 : vector<8x128xf32>
    %103 = vector.broadcast %c1_i32_27 : i32 to vector<8x1xi32>
    %104 = arith.cmpi slt, %103, %9 : vector<8x1xi32>
    %105 = vector.shape_cast %104 : vector<8x1xi1> to vector<8x1xi1>
    %106 = vector.broadcast %105 : vector<8x1xi1> to vector<8x128xi1>
    %107 = arith.select %106, %102, %58 : vector<8x128xi1>, vector<8x128xf32>
    %108 = vector.shape_cast %104 : vector<8x1xi1> to vector<8x1xi1>
    %109 = vector.broadcast %108 : vector<8x1xi1> to vector<8x128xi1>
    %110 = arith.select %109, %100, %61 : vector<8x128xi1>, vector<8x128xf32>
    %c2_i32 = arith.constant 2 : i32
    %111 = arith.truncf %107 : vector<8x128xf32> to vector<8x128xbf16>
    %c0_42 = arith.constant 0 : index
    %c0_43 = arith.constant 0 : index
    %112 = vector.load %arg4[%c0_42, %c0_43] : memref<128x512xbf16, #tpu.memory_space<vmem>>, vector<128x512xbf16>
    %cst_44 = arith.constant dense<0.000000e+00> : vector<8x512xf32>
    %113 = tpu.matmul %111, %112, %cst_44 {dimension_numbers = #tpu.dot_dimension_numbers<[1], [0], [0], [1], [0, 0, 1, 1], [], []>} : vector<8x128xbf16>, vector<128x512xbf16>, vector<8x512xf32> -> vector<8x512xf32>
    %114 = arith.index_cast %c2_i32 : i32 to index
    %c0_45 = arith.constant 0 : index
    %c0_46 = arith.constant 0 : index
    %115 = vector.load %arg7[%114, %c0_45, %c0_46] : memref<8x8x512xbf16, #tpu.memory_space<vmem>>, vector<1x8x512xbf16>
    %116 = vector.shape_cast %115 : vector<1x8x512xbf16> to vector<8x512xbf16>
    %117 = arith.extf %116 : vector<8x512xbf16> to vector<8x512xf32>
    %118 = arith.addf %117, %113 : vector<8x512xf32>
    %119 = vector.broadcast %10 : vector<1x512xf32> to vector<8x512xf32>
    %120 = arith.addf %118, %119 : vector<8x512xf32>
    %121 = vector.extract_strided_slice %120 {offsets = [0, 0], sizes = [8, 128], strides = [1, 1]} : vector<8x512xf32> to vector<8x128xf32>
    %cst_47 = arith.constant 5.000000e-01 : f32
    %122 = vector.broadcast %cst_47 : f32 to vector<8x128xf32>
    %123 = arith.mulf %122, %121 : vector<8x128xf32>
    %124 = math.tanh %123 : vector<8x128xf32>
    %cst_48 = arith.constant 5.000000e-01 : f32
    %125 = vector.broadcast %cst_48 : f32 to vector<8x128xf32>
    %126 = arith.mulf %125, %124 : vector<8x128xf32>
    %cst_49 = arith.constant 5.000000e-01 : f32
    %127 = vector.broadcast %cst_49 : f32 to vector<8x128xf32>
    %128 = arith.addf %126, %127 : vector<8x128xf32>
    %129 = vector.extract_strided_slice %120 {offsets = [0, 128], sizes = [8, 128], strides = [1, 1]} : vector<8x512xf32> to vector<8x128xf32>
    %cst_50 = arith.constant 5.000000e-01 : f32
    %130 = vector.broadcast %cst_50 : f32 to vector<8x128xf32>
    %131 = arith.mulf %130, %129 : vector<8x128xf32>
    %132 = math.tanh %131 : vector<8x128xf32>
    %cst_51 = arith.constant 5.000000e-01 : f32
    %133 = vector.broadcast %cst_51 : f32 to vector<8x128xf32>
    %134 = arith.mulf %133, %132 : vector<8x128xf32>
    %cst_52 = arith.constant 5.000000e-01 : f32
    %135 = vector.broadcast %cst_52 : f32 to vector<8x128xf32>
    %136 = arith.addf %134, %135 : vector<8x128xf32>
    %137 = vector.extract_strided_slice %120 {offsets = [0, 256], sizes = [8, 128], strides = [1, 1]} : vector<8x512xf32> to vector<8x128xf32>
    %138 = math.tanh %137 : vector<8x128xf32>
    %139 = vector.extract_strided_slice %120 {offsets = [0, 384], sizes = [8, 128], strides = [1, 1]} : vector<8x512xf32> to vector<8x128xf32>
    %cst_53 = arith.constant 5.000000e-01 : f32
    %140 = vector.broadcast %cst_53 : f32 to vector<8x128xf32>
    %141 = arith.mulf %140, %139 : vector<8x128xf32>
    %142 = math.tanh %141 : vector<8x128xf32>
    %cst_54 = arith.constant 5.000000e-01 : f32
    %143 = vector.broadcast %cst_54 : f32 to vector<8x128xf32>
    %144 = arith.mulf %143, %142 : vector<8x128xf32>
    %cst_55 = arith.constant 5.000000e-01 : f32
    %145 = vector.broadcast %cst_55 : f32 to vector<8x128xf32>
    %146 = arith.addf %144, %145 : vector<8x128xf32>
    %147 = arith.mulf %136, %110 : vector<8x128xf32>
    %148 = arith.mulf %128, %138 : vector<8x128xf32>
    %149 = arith.addf %147, %148 : vector<8x128xf32>
    %150 = math.tanh %149 : vector<8x128xf32>
    %151 = arith.mulf %146, %150 : vector<8x128xf32>
    %152 = vector.broadcast %c2_i32 : i32 to vector<8x1xi32>
    %153 = arith.cmpi slt, %152, %9 : vector<8x1xi32>
    %154 = vector.shape_cast %153 : vector<8x1xi1> to vector<8x1xi1>
    %155 = vector.broadcast %154 : vector<8x1xi1> to vector<8x128xi1>
    %156 = arith.select %155, %151, %107 : vector<8x128xi1>, vector<8x128xf32>
    %157 = vector.shape_cast %153 : vector<8x1xi1> to vector<8x1xi1>
    %158 = vector.broadcast %157 : vector<8x1xi1> to vector<8x128xi1>
    %159 = arith.select %158, %149, %110 : vector<8x128xi1>, vector<8x128xf32>
    %c3_i32 = arith.constant 3 : i32
    %160 = arith.truncf %156 : vector<8x128xf32> to vector<8x128xbf16>
    %c0_56 = arith.constant 0 : index
    %c0_57 = arith.constant 0 : index
    %161 = vector.load %arg4[%c0_56, %c0_57] : memref<128x512xbf16, #tpu.memory_space<vmem>>, vector<128x512xbf16>
    %cst_58 = arith.constant dense<0.000000e+00> : vector<8x512xf32>
    %162 = tpu.matmul %160, %161, %cst_58 {dimension_numbers = #tpu.dot_dimension_numbers<[1], [0], [0], [1], [0, 0, 1, 1], [], []>} : vector<8x128xbf16>, vector<128x512xbf16>, vector<8x512xf32> -> vector<8x512xf32>
    %163 = arith.index_cast %c3_i32 : i32 to index
    %c0_59 = arith.constant 0 : index
    %c0_60 = arith.constant 0 : index
    %164 = vector.load %arg7[%163, %c0_59, %c0_60] : memref<8x8x512xbf16, #tpu.memory_space<vmem>>, vector<1x8x512xbf16>
    %165 = vector.shape_cast %164 : vector<1x8x512xbf16> to vector<8x512xbf16>
    %166 = arith.extf %165 : vector<8x512xbf16> to vector<8x512xf32>
    %167 = arith.addf %166, %162 : vector<8x512xf32>
    %168 = vector.broadcast %10 : vector<1x512xf32> to vector<8x512xf32>
    %169 = arith.addf %167, %168 : vector<8x512xf32>
    %170 = vector.extract_strided_slice %169 {offsets = [0, 0], sizes = [8, 128], strides = [1, 1]} : vector<8x512xf32> to vector<8x128xf32>
    %cst_61 = arith.constant 5.000000e-01 : f32
    %171 = vector.broadcast %cst_61 : f32 to vector<8x128xf32>
    %172 = arith.mulf %171, %170 : vector<8x128xf32>
    %173 = math.tanh %172 : vector<8x128xf32>
    %cst_62 = arith.constant 5.000000e-01 : f32
    %174 = vector.broadcast %cst_62 : f32 to vector<8x128xf32>
    %175 = arith.mulf %174, %173 : vector<8x128xf32>
    %cst_63 = arith.constant 5.000000e-01 : f32
    %176 = vector.broadcast %cst_63 : f32 to vector<8x128xf32>
    %177 = arith.addf %175, %176 : vector<8x128xf32>
    %178 = vector.extract_strided_slice %169 {offsets = [0, 128], sizes = [8, 128], strides = [1, 1]} : vector<8x512xf32> to vector<8x128xf32>
    %cst_64 = arith.constant 5.000000e-01 : f32
    %179 = vector.broadcast %cst_64 : f32 to vector<8x128xf32>
    %180 = arith.mulf %179, %178 : vector<8x128xf32>
    %181 = math.tanh %180 : vector<8x128xf32>
    %cst_65 = arith.constant 5.000000e-01 : f32
    %182 = vector.broadcast %cst_65 : f32 to vector<8x128xf32>
    %183 = arith.mulf %182, %181 : vector<8x128xf32>
    %cst_66 = arith.constant 5.000000e-01 : f32
    %184 = vector.broadcast %cst_66 : f32 to vector<8x128xf32>
    %185 = arith.addf %183, %184 : vector<8x128xf32>
    %186 = vector.extract_strided_slice %169 {offsets = [0, 256], sizes = [8, 128], strides = [1, 1]} : vector<8x512xf32> to vector<8x128xf32>
    %187 = math.tanh %186 : vector<8x128xf32>
    %188 = vector.extract_strided_slice %169 {offsets = [0, 384], sizes = [8, 128], strides = [1, 1]} : vector<8x512xf32> to vector<8x128xf32>
    %cst_67 = arith.constant 5.000000e-01 : f32
    %189 = vector.broadcast %cst_67 : f32 to vector<8x128xf32>
    %190 = arith.mulf %189, %188 : vector<8x128xf32>
    %191 = math.tanh %190 : vector<8x128xf32>
    %cst_68 = arith.constant 5.000000e-01 : f32
    %192 = vector.broadcast %cst_68 : f32 to vector<8x128xf32>
    %193 = arith.mulf %192, %191 : vector<8x128xf32>
    %cst_69 = arith.constant 5.000000e-01 : f32
    %194 = vector.broadcast %cst_69 : f32 to vector<8x128xf32>
    %195 = arith.addf %193, %194 : vector<8x128xf32>
    %196 = arith.mulf %185, %159 : vector<8x128xf32>
    %197 = arith.mulf %177, %187 : vector<8x128xf32>
    %198 = arith.addf %196, %197 : vector<8x128xf32>
    %199 = math.tanh %198 : vector<8x128xf32>
    %200 = arith.mulf %195, %199 : vector<8x128xf32>
    %201 = vector.broadcast %c3_i32 : i32 to vector<8x1xi32>
    %202 = arith.cmpi slt, %201, %9 : vector<8x1xi32>
    %203 = vector.shape_cast %202 : vector<8x1xi1> to vector<8x1xi1>
    %204 = vector.broadcast %203 : vector<8x1xi1> to vector<8x128xi1>
    %205 = arith.select %204, %200, %156 : vector<8x128xi1>, vector<8x128xf32>
    %206 = vector.shape_cast %202 : vector<8x1xi1> to vector<8x1xi1>
    %207 = vector.broadcast %206 : vector<8x1xi1> to vector<8x128xi1>
    %208 = arith.select %207, %198, %159 : vector<8x128xi1>, vector<8x128xf32>
    %c4_i32 = arith.constant 4 : i32
    %209 = arith.truncf %205 : vector<8x128xf32> to vector<8x128xbf16>
    %c0_70 = arith.constant 0 : index
    %c0_71 = arith.constant 0 : index
    %210 = vector.load %arg4[%c0_70, %c0_71] : memref<128x512xbf16, #tpu.memory_space<vmem>>, vector<128x512xbf16>
    %cst_72 = arith.constant dense<0.000000e+00> : vector<8x512xf32>
    %211 = tpu.matmul %209, %210, %cst_72 {dimension_numbers = #tpu.dot_dimension_numbers<[1], [0], [0], [1], [0, 0, 1, 1], [], []>} : vector<8x128xbf16>, vector<128x512xbf16>, vector<8x512xf32> -> vector<8x512xf32>
    %212 = arith.index_cast %c4_i32 : i32 to index
    %c0_73 = arith.constant 0 : index
    %c0_74 = arith.constant 0 : index
    %213 = vector.load %arg7[%212, %c0_73, %c0_74] : memref<8x8x512xbf16, #tpu.memory_space<vmem>>, vector<1x8x512xbf16>
    %214 = vector.shape_cast %213 : vector<1x8x512xbf16> to vector<8x512xbf16>
    %215 = arith.extf %214 : vector<8x512xbf16> to vector<8x512xf32>
    %216 = arith.addf %215, %211 : vector<8x512xf32>
    %217 = vector.broadcast %10 : vector<1x512xf32> to vector<8x512xf32>
    %218 = arith.addf %216, %217 : vector<8x512xf32>
    %219 = vector.extract_strided_slice %218 {offsets = [0, 0], sizes = [8, 128], strides = [1, 1]} : vector<8x512xf32> to vector<8x128xf32>
    %cst_75 = arith.constant 5.000000e-01 : f32
    %220 = vector.broadcast %cst_75 : f32 to vector<8x128xf32>
    %221 = arith.mulf %220, %219 : vector<8x128xf32>
    %222 = math.tanh %221 : vector<8x128xf32>
    %cst_76 = arith.constant 5.000000e-01 : f32
    %223 = vector.broadcast %cst_76 : f32 to vector<8x128xf32>
    %224 = arith.mulf %223, %222 : vector<8x128xf32>
    %cst_77 = arith.constant 5.000000e-01 : f32
    %225 = vector.broadcast %cst_77 : f32 to vector<8x128xf32>
    %226 = arith.addf %224, %225 : vector<8x128xf32>
    %227 = vector.extract_strided_slice %218 {offsets = [0, 128], sizes = [8, 128], strides = [1, 1]} : vector<8x512xf32> to vector<8x128xf32>
    %cst_78 = arith.constant 5.000000e-01 : f32
    %228 = vector.broadcast %cst_78 : f32 to vector<8x128xf32>
    %229 = arith.mulf %228, %227 : vector<8x128xf32>
    %230 = math.tanh %229 : vector<8x128xf32>
    %cst_79 = arith.constant 5.000000e-01 : f32
    %231 = vector.broadcast %cst_79 : f32 to vector<8x128xf32>
    %232 = arith.mulf %231, %230 : vector<8x128xf32>
    %cst_80 = arith.constant 5.000000e-01 : f32
    %233 = vector.broadcast %cst_80 : f32 to vector<8x128xf32>
    %234 = arith.addf %232, %233 : vector<8x128xf32>
    %235 = vector.extract_strided_slice %218 {offsets = [0, 256], sizes = [8, 128], strides = [1, 1]} : vector<8x512xf32> to vector<8x128xf32>
    %236 = math.tanh %235 : vector<8x128xf32>
    %237 = vector.extract_strided_slice %218 {offsets = [0, 384], sizes = [8, 128], strides = [1, 1]} : vector<8x512xf32> to vector<8x128xf32>
    %cst_81 = arith.constant 5.000000e-01 : f32
    %238 = vector.broadcast %cst_81 : f32 to vector<8x128xf32>
    %239 = arith.mulf %238, %237 : vector<8x128xf32>
    %240 = math.tanh %239 : vector<8x128xf32>
    %cst_82 = arith.constant 5.000000e-01 : f32
    %241 = vector.broadcast %cst_82 : f32 to vector<8x128xf32>
    %242 = arith.mulf %241, %240 : vector<8x128xf32>
    %cst_83 = arith.constant 5.000000e-01 : f32
    %243 = vector.broadcast %cst_83 : f32 to vector<8x128xf32>
    %244 = arith.addf %242, %243 : vector<8x128xf32>
    %245 = arith.mulf %234, %208 : vector<8x128xf32>
    %246 = arith.mulf %226, %236 : vector<8x128xf32>
    %247 = arith.addf %245, %246 : vector<8x128xf32>
    %248 = math.tanh %247 : vector<8x128xf32>
    %249 = arith.mulf %244, %248 : vector<8x128xf32>
    %250 = vector.broadcast %c4_i32 : i32 to vector<8x1xi32>
    %251 = arith.cmpi slt, %250, %9 : vector<8x1xi32>
    %252 = vector.shape_cast %251 : vector<8x1xi1> to vector<8x1xi1>
    %253 = vector.broadcast %252 : vector<8x1xi1> to vector<8x128xi1>
    %254 = arith.select %253, %249, %205 : vector<8x128xi1>, vector<8x128xf32>
    %255 = vector.shape_cast %251 : vector<8x1xi1> to vector<8x1xi1>
    %256 = vector.broadcast %255 : vector<8x1xi1> to vector<8x128xi1>
    %257 = arith.select %256, %247, %208 : vector<8x128xi1>, vector<8x128xf32>
    %c5_i32 = arith.constant 5 : i32
    %258 = arith.truncf %254 : vector<8x128xf32> to vector<8x128xbf16>
    %c0_84 = arith.constant 0 : index
    %c0_85 = arith.constant 0 : index
    %259 = vector.load %arg4[%c0_84, %c0_85] : memref<128x512xbf16, #tpu.memory_space<vmem>>, vector<128x512xbf16>
    %cst_86 = arith.constant dense<0.000000e+00> : vector<8x512xf32>
    %260 = tpu.matmul %258, %259, %cst_86 {dimension_numbers = #tpu.dot_dimension_numbers<[1], [0], [0], [1], [0, 0, 1, 1], [], []>} : vector<8x128xbf16>, vector<128x512xbf16>, vector<8x512xf32> -> vector<8x512xf32>
    %261 = arith.index_cast %c5_i32 : i32 to index
    %c0_87 = arith.constant 0 : index
    %c0_88 = arith.constant 0 : index
    %262 = vector.load %arg7[%261, %c0_87, %c0_88] : memref<8x8x512xbf16, #tpu.memory_space<vmem>>, vector<1x8x512xbf16>
    %263 = vector.shape_cast %262 : vector<1x8x512xbf16> to vector<8x512xbf16>
    %264 = arith.extf %263 : vector<8x512xbf16> to vector<8x512xf32>
    %265 = arith.addf %264, %260 : vector<8x512xf32>
    %266 = vector.broadcast %10 : vector<1x512xf32> to vector<8x512xf32>
    %267 = arith.addf %265, %266 : vector<8x512xf32>
    %268 = vector.extract_strided_slice %267 {offsets = [0, 0], sizes = [8, 128], strides = [1, 1]} : vector<8x512xf32> to vector<8x128xf32>
    %cst_89 = arith.constant 5.000000e-01 : f32
    %269 = vector.broadcast %cst_89 : f32 to vector<8x128xf32>
    %270 = arith.mulf %269, %268 : vector<8x128xf32>
    %271 = math.tanh %270 : vector<8x128xf32>
    %cst_90 = arith.constant 5.000000e-01 : f32
    %272 = vector.broadcast %cst_90 : f32 to vector<8x128xf32>
    %273 = arith.mulf %272, %271 : vector<8x128xf32>
    %cst_91 = arith.constant 5.000000e-01 : f32
    %274 = vector.broadcast %cst_91 : f32 to vector<8x128xf32>
    %275 = arith.addf %273, %274 : vector<8x128xf32>
    %276 = vector.extract_strided_slice %267 {offsets = [0, 128], sizes = [8, 128], strides = [1, 1]} : vector<8x512xf32> to vector<8x128xf32>
    %cst_92 = arith.constant 5.000000e-01 : f32
    %277 = vector.broadcast %cst_92 : f32 to vector<8x128xf32>
    %278 = arith.mulf %277, %276 : vector<8x128xf32>
    %279 = math.tanh %278 : vector<8x128xf32>
    %cst_93 = arith.constant 5.000000e-01 : f32
    %280 = vector.broadcast %cst_93 : f32 to vector<8x128xf32>
    %281 = arith.mulf %280, %279 : vector<8x128xf32>
    %cst_94 = arith.constant 5.000000e-01 : f32
    %282 = vector.broadcast %cst_94 : f32 to vector<8x128xf32>
    %283 = arith.addf %281, %282 : vector<8x128xf32>
    %284 = vector.extract_strided_slice %267 {offsets = [0, 256], sizes = [8, 128], strides = [1, 1]} : vector<8x512xf32> to vector<8x128xf32>
    %285 = math.tanh %284 : vector<8x128xf32>
    %286 = vector.extract_strided_slice %267 {offsets = [0, 384], sizes = [8, 128], strides = [1, 1]} : vector<8x512xf32> to vector<8x128xf32>
    %cst_95 = arith.constant 5.000000e-01 : f32
    %287 = vector.broadcast %cst_95 : f32 to vector<8x128xf32>
    %288 = arith.mulf %287, %286 : vector<8x128xf32>
    %289 = math.tanh %288 : vector<8x128xf32>
    %cst_96 = arith.constant 5.000000e-01 : f32
    %290 = vector.broadcast %cst_96 : f32 to vector<8x128xf32>
    %291 = arith.mulf %290, %289 : vector<8x128xf32>
    %cst_97 = arith.constant 5.000000e-01 : f32
    %292 = vector.broadcast %cst_97 : f32 to vector<8x128xf32>
    %293 = arith.addf %291, %292 : vector<8x128xf32>
    %294 = arith.mulf %283, %257 : vector<8x128xf32>
    %295 = arith.mulf %275, %285 : vector<8x128xf32>
    %296 = arith.addf %294, %295 : vector<8x128xf32>
    %297 = math.tanh %296 : vector<8x128xf32>
    %298 = arith.mulf %293, %297 : vector<8x128xf32>
    %299 = vector.broadcast %c5_i32 : i32 to vector<8x1xi32>
    %300 = arith.cmpi slt, %299, %9 : vector<8x1xi32>
    %301 = vector.shape_cast %300 : vector<8x1xi1> to vector<8x1xi1>
    %302 = vector.broadcast %301 : vector<8x1xi1> to vector<8x128xi1>
    %303 = arith.select %302, %298, %254 : vector<8x128xi1>, vector<8x128xf32>
    %304 = vector.shape_cast %300 : vector<8x1xi1> to vector<8x1xi1>
    %305 = vector.broadcast %304 : vector<8x1xi1> to vector<8x128xi1>
    %306 = arith.select %305, %296, %257 : vector<8x128xi1>, vector<8x128xf32>
    %c6_i32 = arith.constant 6 : i32
    %307 = arith.truncf %303 : vector<8x128xf32> to vector<8x128xbf16>
    %c0_98 = arith.constant 0 : index
    %c0_99 = arith.constant 0 : index
    %308 = vector.load %arg4[%c0_98, %c0_99] : memref<128x512xbf16, #tpu.memory_space<vmem>>, vector<128x512xbf16>
    %cst_100 = arith.constant dense<0.000000e+00> : vector<8x512xf32>
    %309 = tpu.matmul %307, %308, %cst_100 {dimension_numbers = #tpu.dot_dimension_numbers<[1], [0], [0], [1], [0, 0, 1, 1], [], []>} : vector<8x128xbf16>, vector<128x512xbf16>, vector<8x512xf32> -> vector<8x512xf32>
    %310 = arith.index_cast %c6_i32 : i32 to index
    %c0_101 = arith.constant 0 : index
    %c0_102 = arith.constant 0 : index
    %311 = vector.load %arg7[%310, %c0_101, %c0_102] : memref<8x8x512xbf16, #tpu.memory_space<vmem>>, vector<1x8x512xbf16>
    %312 = vector.shape_cast %311 : vector<1x8x512xbf16> to vector<8x512xbf16>
    %313 = arith.extf %312 : vector<8x512xbf16> to vector<8x512xf32>
    %314 = arith.addf %313, %309 : vector<8x512xf32>
    %315 = vector.broadcast %10 : vector<1x512xf32> to vector<8x512xf32>
    %316 = arith.addf %314, %315 : vector<8x512xf32>
    %317 = vector.extract_strided_slice %316 {offsets = [0, 0], sizes = [8, 128], strides = [1, 1]} : vector<8x512xf32> to vector<8x128xf32>
    %cst_103 = arith.constant 5.000000e-01 : f32
    %318 = vector.broadcast %cst_103 : f32 to vector<8x128xf32>
    %319 = arith.mulf %318, %317 : vector<8x128xf32>
    %320 = math.tanh %319 : vector<8x128xf32>
    %cst_104 = arith.constant 5.000000e-01 : f32
    %321 = vector.broadcast %cst_104 : f32 to vector<8x128xf32>
    %322 = arith.mulf %321, %320 : vector<8x128xf32>
    %cst_105 = arith.constant 5.000000e-01 : f32
    %323 = vector.broadcast %cst_105 : f32 to vector<8x128xf32>
    %324 = arith.addf %322, %323 : vector<8x128xf32>
    %325 = vector.extract_strided_slice %316 {offsets = [0, 128], sizes = [8, 128], strides = [1, 1]} : vector<8x512xf32> to vector<8x128xf32>
    %cst_106 = arith.constant 5.000000e-01 : f32
    %326 = vector.broadcast %cst_106 : f32 to vector<8x128xf32>
    %327 = arith.mulf %326, %325 : vector<8x128xf32>
    %328 = math.tanh %327 : vector<8x128xf32>
    %cst_107 = arith.constant 5.000000e-01 : f32
    %329 = vector.broadcast %cst_107 : f32 to vector<8x128xf32>
    %330 = arith.mulf %329, %328 : vector<8x128xf32>
    %cst_108 = arith.constant 5.000000e-01 : f32
    %331 = vector.broadcast %cst_108 : f32 to vector<8x128xf32>
    %332 = arith.addf %330, %331 : vector<8x128xf32>
    %333 = vector.extract_strided_slice %316 {offsets = [0, 256], sizes = [8, 128], strides = [1, 1]} : vector<8x512xf32> to vector<8x128xf32>
    %334 = math.tanh %333 : vector<8x128xf32>
    %335 = vector.extract_strided_slice %316 {offsets = [0, 384], sizes = [8, 128], strides = [1, 1]} : vector<8x512xf32> to vector<8x128xf32>
    %cst_109 = arith.constant 5.000000e-01 : f32
    %336 = vector.broadcast %cst_109 : f32 to vector<8x128xf32>
    %337 = arith.mulf %336, %335 : vector<8x128xf32>
    %338 = math.tanh %337 : vector<8x128xf32>
    %cst_110 = arith.constant 5.000000e-01 : f32
    %339 = vector.broadcast %cst_110 : f32 to vector<8x128xf32>
    %340 = arith.mulf %339, %338 : vector<8x128xf32>
    %cst_111 = arith.constant 5.000000e-01 : f32
    %341 = vector.broadcast %cst_111 : f32 to vector<8x128xf32>
    %342 = arith.addf %340, %341 : vector<8x128xf32>
    %343 = arith.mulf %332, %306 : vector<8x128xf32>
    %344 = arith.mulf %324, %334 : vector<8x128xf32>
    %345 = arith.addf %343, %344 : vector<8x128xf32>
    %346 = math.tanh %345 : vector<8x128xf32>
    %347 = arith.mulf %342, %346 : vector<8x128xf32>
    %348 = vector.broadcast %c6_i32 : i32 to vector<8x1xi32>
    %349 = arith.cmpi slt, %348, %9 : vector<8x1xi32>
    %350 = vector.shape_cast %349 : vector<8x1xi1> to vector<8x1xi1>
    %351 = vector.broadcast %350 : vector<8x1xi1> to vector<8x128xi1>
    %352 = arith.select %351, %347, %303 : vector<8x128xi1>, vector<8x128xf32>
    %353 = vector.shape_cast %349 : vector<8x1xi1> to vector<8x1xi1>
    %354 = vector.broadcast %353 : vector<8x1xi1> to vector<8x128xi1>
    %355 = arith.select %354, %345, %306 : vector<8x128xi1>, vector<8x128xf32>
    %c7_i32 = arith.constant 7 : i32
    %356 = arith.truncf %352 : vector<8x128xf32> to vector<8x128xbf16>
    %c0_112 = arith.constant 0 : index
    %c0_113 = arith.constant 0 : index
    %357 = vector.load %arg4[%c0_112, %c0_113] : memref<128x512xbf16, #tpu.memory_space<vmem>>, vector<128x512xbf16>
    %cst_114 = arith.constant dense<0.000000e+00> : vector<8x512xf32>
    %358 = tpu.matmul %356, %357, %cst_114 {dimension_numbers = #tpu.dot_dimension_numbers<[1], [0], [0], [1], [0, 0, 1, 1], [], []>} : vector<8x128xbf16>, vector<128x512xbf16>, vector<8x512xf32> -> vector<8x512xf32>
    %359 = arith.index_cast %c7_i32 : i32 to index
    %c0_115 = arith.constant 0 : index
    %c0_116 = arith.constant 0 : index
    %360 = vector.load %arg7[%359, %c0_115, %c0_116] : memref<8x8x512xbf16, #tpu.memory_space<vmem>>, vector<1x8x512xbf16>
    %361 = vector.shape_cast %360 : vector<1x8x512xbf16> to vector<8x512xbf16>
    %362 = arith.extf %361 : vector<8x512xbf16> to vector<8x512xf32>
    %363 = arith.addf %362, %358 : vector<8x512xf32>
    %364 = vector.broadcast %10 : vector<1x512xf32> to vector<8x512xf32>
    %365 = arith.addf %363, %364 : vector<8x512xf32>
    %366 = vector.extract_strided_slice %365 {offsets = [0, 0], sizes = [8, 128], strides = [1, 1]} : vector<8x512xf32> to vector<8x128xf32>
    %cst_117 = arith.constant 5.000000e-01 : f32
    %367 = vector.broadcast %cst_117 : f32 to vector<8x128xf32>
    %368 = arith.mulf %367, %366 : vector<8x128xf32>
    %369 = math.tanh %368 : vector<8x128xf32>
    %cst_118 = arith.constant 5.000000e-01 : f32
    %370 = vector.broadcast %cst_118 : f32 to vector<8x128xf32>
    %371 = arith.mulf %370, %369 : vector<8x128xf32>
    %cst_119 = arith.constant 5.000000e-01 : f32
    %372 = vector.broadcast %cst_119 : f32 to vector<8x128xf32>
    %373 = arith.addf %371, %372 : vector<8x128xf32>
    %374 = vector.extract_strided_slice %365 {offsets = [0, 128], sizes = [8, 128], strides = [1, 1]} : vector<8x512xf32> to vector<8x128xf32>
    %cst_120 = arith.constant 5.000000e-01 : f32
    %375 = vector.broadcast %cst_120 : f32 to vector<8x128xf32>
    %376 = arith.mulf %375, %374 : vector<8x128xf32>
    %377 = math.tanh %376 : vector<8x128xf32>
    %cst_121 = arith.constant 5.000000e-01 : f32
    %378 = vector.broadcast %cst_121 : f32 to vector<8x128xf32>
    %379 = arith.mulf %378, %377 : vector<8x128xf32>
    %cst_122 = arith.constant 5.000000e-01 : f32
    %380 = vector.broadcast %cst_122 : f32 to vector<8x128xf32>
    %381 = arith.addf %379, %380 : vector<8x128xf32>
    %382 = vector.extract_strided_slice %365 {offsets = [0, 256], sizes = [8, 128], strides = [1, 1]} : vector<8x512xf32> to vector<8x128xf32>
    %383 = math.tanh %382 : vector<8x128xf32>
    %384 = vector.extract_strided_slice %365 {offsets = [0, 384], sizes = [8, 128], strides = [1, 1]} : vector<8x512xf32> to vector<8x128xf32>
    %cst_123 = arith.constant 5.000000e-01 : f32
    %385 = vector.broadcast %cst_123 : f32 to vector<8x128xf32>
    %386 = arith.mulf %385, %384 : vector<8x128xf32>
    %387 = math.tanh %386 : vector<8x128xf32>
    %cst_124 = arith.constant 5.000000e-01 : f32
    %388 = vector.broadcast %cst_124 : f32 to vector<8x128xf32>
    %389 = arith.mulf %388, %387 : vector<8x128xf32>
    %cst_125 = arith.constant 5.000000e-01 : f32
    %390 = vector.broadcast %cst_125 : f32 to vector<8x128xf32>
    %391 = arith.addf %389, %390 : vector<8x128xf32>
    %392 = arith.mulf %381, %355 : vector<8x128xf32>
    %393 = arith.mulf %373, %383 : vector<8x128xf32>
    %394 = arith.addf %392, %393 : vector<8x128xf32>
    %395 = math.tanh %394 : vector<8x128xf32>
    %396 = arith.mulf %391, %395 : vector<8x128xf32>
    %397 = vector.broadcast %c7_i32 : i32 to vector<8x1xi32>
    %398 = arith.cmpi slt, %397, %9 : vector<8x1xi32>
    %399 = vector.shape_cast %398 : vector<8x1xi1> to vector<8x1xi1>
    %400 = vector.broadcast %399 : vector<8x1xi1> to vector<8x128xi1>
    %401 = arith.select %400, %396, %352 : vector<8x128xi1>, vector<8x128xf32>
    %402 = vector.shape_cast %398 : vector<8x1xi1> to vector<8x1xi1>
    %403 = vector.broadcast %402 : vector<8x1xi1> to vector<8x128xi1>
    %404 = arith.select %403, %394, %355 : vector<8x128xi1>, vector<8x128xf32>
    %c8_i32 = arith.constant 8 : i32
    %c0_i32_126 = arith.constant 0 : i32
    %405 = vector.broadcast %c0_i32_126 : i32 to vector<8x1xi32>
    %406 = arith.cmpi sgt, %7, %405 : vector<8x1xi32>
    %cst_127 = arith.constant 0.000000e+00 : f32
    %407 = vector.shape_cast %406 : vector<8x1xi1> to vector<8x1xi1>
    %408 = vector.broadcast %407 : vector<8x1xi1> to vector<8x128xi1>
    %409 = vector.broadcast %cst_127 : f32 to vector<8x128xf32>
    %410 = arith.select %408, %401, %409 : vector<8x128xi1>, vector<8x128xf32>
    %c0_128 = arith.constant 0 : index
    %c0_129 = arith.constant 0 : index
    %411 = vector.load %arg6[%c0_128, %c0_129] : memref<8x128xf32, #tpu.memory_space<vmem>>, vector<8x128xf32>
    tpu.vector_store %arg6[%c0_128, %c0_129], %410 {strides = array<i32>} : memref<8x128xf32, #tpu.memory_space<vmem>>, vector<8x128xf32>,
    return
  }
  func.func @transform_0(%arg0: i32) -> (i32, i32) {
    %c0_i32 = arith.constant 0 : i32
    %c0_i32_0 = arith.constant 0 : i32
    return %arg0, %c0_i32 : i32, i32
  }
  func.func @transform_1(%arg0: i32) -> (i32, i32, i32) {
    %c0_i32 = arith.constant 0 : i32
    %c0_i32_0 = arith.constant 0 : i32
    %c0_i32_1 = arith.constant 0 : i32
    return %c0_i32, %arg0, %c0_i32_0 : i32, i32, i32
  }
  func.func @transform_2(%arg0: i32) -> (i32, i32) {
    %c0_i32 = arith.constant 0 : i32
    %c0_i32_0 = arith.constant 0 : i32
    %c0_i32_1 = arith.constant 0 : i32
    return %c0_i32, %c0_i32_0 : i32, i32
  }
  func.func @transform_3(%arg0: i32) -> (i32, i32) {
    %c0_i32 = arith.constant 0 : i32
    %c0_i32_0 = arith.constant 0 : i32
    %c0_i32_1 = arith.constant 0 : i32
    return %c0_i32, %c0_i32_0 : i32, i32
  }
  func.func @transform_4(%arg0: i32) -> (i32, i32) {
    %c0_i32 = arith.constant 0 : i32
    %c0_i32_0 = arith.constant 0 : i32
    %c0_i32_1 = arith.constant 0 : i32
    return %c0_i32, %c0_i32_0 : i32, i32
  }
  func.func @transform_5(%arg0: i32) -> (i32, i32) {
    %c0_i32 = arith.constant 0 : i32
    %c0_i32_0 = arith.constant 0 : i32
    return %arg0, %c0_i32 : i32, i32
  }
}

</mosaic_0001>

<bundles_post_ra>
// kernel: tpu_custom_call.1
= control target key start
LH: loop header
LB: loop body
LE: loop exit
PB: predicated region body
PF: predicated region fallthrough
CT: control target
= control target key end

     0   :  { %10 = vsyncpa [#allocation4], 0  ;;  %s2843_s0 = inlined_call_operand.vmem [shape: s32[8,1], index: 0, kind: input, shape index: {}]   ;;  %s2844_s1 = inlined_call_operand.hbm [shape: bf16[8,8,128], index: 1, kind: input, shape index: {}]   ;;  %s2845_s2 = inlined_call_operand.hbm [shape: bf16[128,512], index: 2, kind: input, shape index: {}]   ;;  %s2846_s3 = inlined_call_operand.hbm [shape: bf16[128,512], index: 3, kind: input, shape index: {}]   ;;  %s2847_s4 = inlined_call_operand.vmem [shape: f32[1,512], index: 4, kind: input, shape index: {}]   ;;  %s2848_s5 = inlined_call_operand.hbm [shape: f32[8,128], index: 5, kind: output, shape index: {}]  }
   0x1   :  { %11 = vsyncpa [#allocation7], 0 }
   0x2   :  { %12 = vsyncpa [#allocation5], 0  ;;  %s2190_s18 = smov [#allocation6]  }
   0x3   :  { %s32_s19 = sshll.u32 %s2190_s18, 4  ;;  %s33_s19 = int_to_ptr.vmem [resolvable:$true] %s32_s19 }
   0x4   :  { %s2112_s20 = scalar_lea.vmem %s33_s19, 4096  ;;  %p2117_p1 = scmp.lt.s32.totalorder %s33_s19, %s33_s19 }
   0x5   :  { %p2113_p0 = scmp.ne.s32.totalorder %s33_s19, %s2112_s20  ;;  %p2118_p2 = scmp.lt.s32.totalorder %s2112_s20, %s2112_s20 }
   0x7   :  { %p2119_p3 = por %p2118_p2, %p2117_p1 }
   0x9   :  { %p2120_p4 = pnand %p2119_p3, %p2113_p0 }
   0xb   :  { %2123 = shalt.err (!%p2120_p4)
}
   0xc   :  { %s2191_s21 = smov 256   ;;  %s2192_s22 = smov 16  }
   0xd   :  { %38 = dma.hbm_to_vmem [thread:$0]  %s2845_s2, 4096, %s33_s19, [#allocation7], %s2191_s21, %s2191_s21, %s2192_s22  }
   0xe   :  { %s2193_s25 = smov [#allocation3]  }
   0xf   :  { %s20_s26 = sshll.u32 %s2193_s25, 4  ;;  %s21_s26 = int_to_ptr.vmem [resolvable:$true] %s20_s26 }
  0x10   :  { %s2132_s27 = scalar_lea.vmem %s21_s26, 512  ;;  %p2137_p6 = scmp.lt.s32.totalorder %s21_s26, %s21_s26 }
  0x11   :  { %p2133_p5 = scmp.ne.s32.totalorder %s21_s26, %s2132_s27  ;;  %p2138_p7 = scmp.lt.s32.totalorder %s2132_s27, %s2132_s27 }
  0x13   :  { %p2139_p8 = por %p2138_p7, %p2137_p6 }
  0x15   :  { %p2140_p9 = pnand %p2139_p8, %p2133_p5 }
  0x17   :  { %2143 = shalt.err (!%p2140_p9)
}
  0x18   :  { %s2194_s28 = smov 64   ;;  %s2195_s29 = smov 4  }
  0x19   :  { %26 = dma.hbm_to_vmem [thread:$0]  %s2844_s1, 512, %s21_s26, [#allocation4], %s2194_s28, %s2194_s28, %s2195_s29  }
  0x1a   :  { %s2196_s7 = smov [#allocation8]  }
  0x1b   :  { %s44_s8 = sshll.u32 %s2196_s7, 4  ;;  %s45_s8 = int_to_ptr.vmem [resolvable:$true] %s44_s8 }
  0x1c   :  { %s2152_s2 = scalar_lea.vmem %s45_s8, 4096  ;;  %p2157_p11 = scmp.lt.s32.totalorder %s45_s8, %s45_s8 }
  0x1d   :  { %p2153_p10 = scmp.ne.s32.totalorder %s45_s8, %s2152_s2  ;;  %p2158_p12 = scmp.lt.s32.totalorder %s2152_s2, %s2152_s2 }
  0x1f   :  { %p2159_p13 = por %p2158_p12, %p2157_p11 }
  0x21   :  { %p2160_p0 = pnand %p2159_p13, %p2153_p10 }
  0x23   :  { %2163 = shalt.err (!%p2160_p0)
}
  0x24   :  { %50 = dma.hbm_to_vmem [thread:$0]  %s2846_s3, 4096, %s45_s8, [#allocation7], %s2191_s21, %s2191_s21, %s2192_s22  }
  0x25   :  { %2184 = dma.done.wait [#allocation4], 512  }
  0x26   :  { %2185 = vsyncadd [#allocation4], 4294966784 }
  0x27   :  { %2186 = dma.done.wait [#allocation7], 8192  }
  0x28   :  { %2187 = vsyncadd [#allocation7], 4294959104  ;;  %v2849_v0 = vmov 0   ;;  %v1892_v1 = vld [vmem:[#allocation6 + $0xe4] ss:$16 sps:$4 sm:$0xff]   ;;  %v1953_v44 = vld [vmem:[#allocation3 + $0x8] sm:$0xff]  }
  0x29   :  { %319 = vmatprep.mubr.bf16.mxu0 %v2849_v0  ;;  %392 = vmatprep.mubr.bf16.mxu1 %v2849_v0  ;;  %v1894_v2 = vld [vmem:[#allocation6 + $0xec] ss:$16 sps:$4 sm:$0xff]   ;;  %v1896_v3 = vld [vmem:[#allocation6 + $0xe0] ss:$16 sps:$4 sm:$0xff]   ;;  %v1897_v4 = vld [vmem:[#allocation6 + $0xe8] ss:$16 sps:$4 sm:$0xff]  }
  0x2a   :  { %1890 = vset.pattern.permute.xlu0 %v2849_v0  ;;  %1891 = vset.pattern.permute.xlu1 %v2849_v0  ;;  %v1898_v5 = vld [vmem:[#allocation6 + $0xc4] ss:$16 sps:$4 sm:$0xff]   ;;  %v1900_v6 = vld [vmem:[#allocation6 + $0xcc] ss:$16 sps:$4 sm:$0xff]   ;;  %v1902_v7 = vld [vmem:[#allocation6 + $0xc0] ss:$16 sps:$4 sm:$0xff]  }
  0x2b   :  { %287 = vmatprep.subr.bf16.mxu0 %v1892_v1  ;;  %360 = vmatprep.subr.bf16.mxu1 %v1894_v2  ;;  %v1903_v8 = vld [vmem:[#allocation6 + $0xc8] ss:$16 sps:$4 sm:$0xff]   ;;  %v1904_v9 = vld [vmem:[#allocation6 + $0xa4] ss:$16 sps:$4 sm:$0xff]   ;;  %v1906_v10 = vld [vmem:[#allocation6 + $0xac] ss:$16 sps:$4 sm:$0xff]  }
  0x2c   :  { %288 = vmatpush1.bf16.msra.mxu0 %v1896_v3  ;;  %361 = vmatpush1.bf16.msra.mxu1 %v1897_v4  ;;  %v1908_v11 = vld [vmem:[#allocation6 + $0xa0] ss:$16 sps:$4 sm:$0xff]   ;;  %v1909_v12 = vld [vmem:[#allocation6 + $0xa8] ss:$16 sps:$4 sm:$0xff]   ;;  %v1910_v13 = vld [vmem:[#allocation6 + $0x84] ss:$16 sps:$4 sm:$0xff]  }
  0x2d   :  { %289 = vmatprep.subr.bf16.mxu0 %v1898_v5  ;;  %362 = vmatprep.subr.bf16.mxu1 %v1900_v6  ;;  %v1912_v14 = vld [vmem:[#allocation6 + $0x8c] ss:$16 sps:$4 sm:$0xff]   ;;  %v1914_v15 = vld [vmem:[#allocation6 + $0x80] ss:$16 sps:$4 sm:$0xff]   ;;  %v1915_v16 = vld [vmem:[#allocation6 + $0x88] ss:$16 sps:$4 sm:$0xff]  }
  0x2e   :  { %v1916_v17 = vld [vmem:[#allocation6 + $0x64] ss:$16 sps:$4 sm:$0xff]   ;;  %v1918_v18 = vld [vmem:[#allocation6 + $0x6c] ss:$16 sps:$4 sm:$0xff]   ;;  %v1920_v19 = vld [vmem:[#allocation6 + $0x60] ss:$16 sps:$4 sm:$0xff]  }
  0x2f   :  { %v1921_v20 = vld [vmem:[#allocation6 + $0x68] ss:$16 sps:$4 sm:$0xff]   ;;  %v1922_v21 = vld [vmem:[#allocation6 + $0x44] ss:$16 sps:$4 sm:$0xff]   ;;  %v1924_v22 = vld [vmem:[#allocation6 + $0x4c] ss:$16 sps:$4 sm:$0xff]  }
  0x30   :  { %290 = vmatpush1.bf16.msra.mxu0 %v1902_v7  ;;  %363 = vmatpush1.bf16.msra.mxu1 %v1903_v8  ;;  %v1926_v23 = vld [vmem:[#allocation6 + $0x40] ss:$16 sps:$4 sm:$0xff]   ;;  %v1927_v24 = vld [vmem:[#allocation6 + $0x48] ss:$16 sps:$4 sm:$0xff]   ;;  %v1928_v25 = vld [vmem:[#allocation6 + $0x24] ss:$16 sps:$4 sm:$0xff]  }
  0x31   :  { %291 = vmatprep.subr.bf16.mxu0 %v1904_v9  ;;  %364 = vmatprep.subr.bf16.mxu1 %v1906_v10  ;;  %v1930_v26 = vld [vmem:[#allocation6 + $0x2c] ss:$16 sps:$4 sm:$0xff]   ;;  %v1932_v27 = vld [vmem:[#allocation6 + $0x20] ss:$16 sps:$4 sm:$0xff]   ;;  %v1933_v28 = vld [vmem:[#allocation6 + $0x28] ss:$16 sps:$4 sm:$0xff]  }
  0x32   :  { %v1934_v29 = vld [vmem:[#allocation6 + $0x4] ss:$16 sps:$4 sm:$0xff]   ;;  %v1936_v30 = vld [vmem:[#allocation6 + $0xc] ss:$16 sps:$4 sm:$0xff]   ;;  %v1938_v31 = vld [vmem:[#allocation6] ss:$16 sps:$4 sm:$0xff]  }
  0x33   :  { %v1939_v32 = vld [vmem:[#allocation6 + $0x8] ss:$16 sps:$4 sm:$0xff]   ;;  %v2242_v33 = vld [vmem:[#allocation8 + $0xe4] ss:$16 sps:$4 sm:$0xff]   ;;  %v2244_v34 = vld [vmem:[#allocation8 + $0xec] ss:$16 sps:$4 sm:$0xff]  }
  0x34   :  { %292 = vmatpush1.bf16.msra.mxu0 %v1908_v11  ;;  %365 = vmatpush1.bf16.msra.mxu1 %v1909_v12  ;;  %v1940_v35 = vld [vmem:[#allocation3] sm:$0xff]   ;;  %v2248_v37 = vld [vmem:[#allocation8 + $0xe8] ss:$16 sps:$4 sm:$0xff]   ;;  %v2254_v39 = vld [vmem:[#allocation8 + $0xcc] ss:$16 sps:$4 sm:$0xff]  }
  0x35   :  { %293 = vmatprep.subr.bf16.mxu0 %v1910_v13  ;;  %366 = vmatprep.subr.bf16.mxu1 %v1912_v14  ;;  %v2246_v36 = vld [vmem:[#allocation8 + $0xe0] ss:$16 sps:$4 sm:$0xff]   ;;  %v2252_v38 = vld [vmem:[#allocation8 + $0xc4] ss:$16 sps:$4 sm:$0xff]   ;;  %v2260_v41 = vld [vmem:[#allocation8 + $0xc8] ss:$16 sps:$4 sm:$0xff]  }
  0x36   :  { %v2256_v40 = vld [vmem:[#allocation8 + $0xc0] ss:$16 sps:$4 sm:$0xff]   ;;  %v2264_v42 = vld [vmem:[#allocation8 + $0xa4] ss:$16 sps:$4 sm:$0xff]   ;;  %v2266_v43 = vld [vmem:[#allocation8 + $0xac] ss:$16 sps:$4 sm:$0xff]  }
  0x37   :  { %v2270_v45 = vld [vmem:[#allocation8 + $0xa0] ss:$16 sps:$4 sm:$0xff]   ;;  %v2272_v46 = vld [vmem:[#allocation8 + $0xa8] ss:$16 sps:$4 sm:$0xff]   ;;  %v2276_v47 = vld [vmem:[#allocation8 + $0x84] ss:$16 sps:$4 sm:$0xff]  }
  0x38   :  { %294 = vmatpush1.bf16.msra.mxu0 %v1914_v15  ;;  %367 = vmatpush1.bf16.msra.mxu1 %v1915_v16  ;;  %v2280_v48 = vld [vmem:[#allocation8 + $0x8c] ss:$16 sps:$4 sm:$0xff]   ;;  %v2282_v49 = vld [vmem:[#allocation8 + $0x80] ss:$16 sps:$4 sm:$0xff]   ;;  %v2284_v50 = vld [vmem:[#allocation8 + $0x88] ss:$16 sps:$4 sm:$0xff]  }
  0x39   :  { %295 = vmatprep.subr.bf16.mxu0 %v1916_v17  ;;  %368 = vmatprep.subr.bf16.mxu1 %v1918_v18  ;;  %v2288_v51 = vld [vmem:[#allocation8 + $0x64] ss:$16 sps:$4 sm:$0xff]   ;;  %v2292_v52 = vld [vmem:[#allocation8 + $0x6c] ss:$16 sps:$4 sm:$0xff]   ;;  %v2304_v55 = vld [vmem:[#allocation8 + $0x60] ss:$16 sps:$4 sm:$0xff]  }
  0x3a   :  { %v2299_v53 = vld [vmem:[%s2843_s0] sm:$0xff]  ;;  %v1966_v54 = vld [vmem:[#allocation3 + $0x10] sm:$0xff]   ;;  %v2306_v56 = vld [vmem:[#allocation8 + $0x68] ss:$16 sps:$4 sm:$0xff]  }
  0x3b   :  { %vm546_vm0 = vcmp.gt.s32.totalorder %v2299_v53, 1  ;;  %v2313_v58 = vld [vmem:[#allocation8 + $0x44] ss:$16 sps:$4 sm:$0xff]   ;;  %v2315_v59 = vld [vmem:[#allocation8 + $0x4c] ss:$16 sps:$4 sm:$0xff]   ;;  %vm1751_vm5 = vcmp.gt.s32.totalorder %v2299_v53, 0 }
  0x3c   :  { %296 = vmatpush1.bf16.msra.mxu0 %v1920_v19  ;;  %369 = vmatpush1.bf16.msra.mxu1 %v1921_v20  ;;  %v2309_v57 = vsel %vm546_vm0, %v2299_v53, 1  ;;  %v2320_v60 = vld [vmem:[#allocation8 + $0x40] ss:$16 sps:$4 sm:$0xff]   ;;  %v2322_v61 = vld [vmem:[#allocation8 + $0x48] ss:$16 sps:$4 sm:$0xff]   ;;  %v1752_v12 = vsel %vm1751_vm5, 1, %v2849_v0 }
  0x3d   :  { %297 = vmatprep.subr.bf16.mxu0 %v1922_v21  ;;  %370 = vmatprep.subr.bf16.mxu1 %v1924_v22  ;;  %vm876_vm1 = vcmp.gt.s32.totalorder %v2309_v57, 0  ;;  %v2327_v63 = vld [vmem:[#allocation8 + $0x24] ss:$16 sps:$4 sm:$0xff]   ;;  %v2329_v1 = vld [vmem:[#allocation8 + $0x2c] ss:$16 sps:$4 sm:$0xff]   ;;  %vm1000_vm2 = vcmp.gt.s32.totalorder %v2309_v57, 1 }
  0x3e   :  { %v877_v62 = vsel %vm876_vm1, 1, %v2849_v0  ;;  %v1979_v2 = vld [vmem:[#allocation3 + $0x18] sm:$0xff]   ;;  %v2335_v3 = vld [vmem:[#allocation8 + $0x20] ss:$16 sps:$4 sm:$0xff]   ;;  %v2341_v5 = vld [vmem:[#allocation8 + $0x4] ss:$16 sps:$4 sm:$0xff]  }
  0x3f   :  { %879 = vperm.xlu0 %1890, %v877_v62   ;;  %v2337_v4 = vld [vmem:[#allocation8 + $0x28] ss:$16 sps:$4 sm:$0xff]   ;;  %v2343_v6 = vld [vmem:[#allocation8 + $0xc] ss:$16 sps:$4 sm:$0xff]   ;;  %v2348_v7 = vld [vmem:[#allocation8] ss:$16 sps:$4 sm:$0xff]  }
  0x40   :  { %298 = vmatpush1.bf16.msra.mxu0 %v1926_v23  ;;  %371 = vmatpush1.bf16.msra.mxu1 %v1927_v24  ;;  %v2350_v8 = vld [vmem:[#allocation8 + $0x8] ss:$16 sps:$4 sm:$0xff]   ;;  %v1001_v9 = vsel %vm1000_vm2, 1, %v2849_v0  ;;  %vm1372_vm3 = vcmp.gt.s32.totalorder %v2309_v57, 4  ;;  %vm1620_vm4 = vcmp.gt.s32.totalorder %v2309_v57, 6  ;;  %vm1124_vm8 = vcmp.gt.s32.totalorder %v2309_v57, 2 }
  0x41   :  { %299 = vmatprep.subr.bf16.mxu0 %v1928_v25  ;;  %372 = vmatprep.subr.bf16.mxu1 %v1930_v26  ;;  %v1373_v10 = vsel %vm1372_vm3, 1, %v2849_v0  ;;  %v1621_v11 = vsel %vm1620_vm4, 1, %v2849_v0  ;;  %vm1248_vm9 = vcmp.gt.s32.totalorder %v2309_v57, 3  ;;  %vm1496_vm10 = vcmp.gt.s32.totalorder %v2309_v57, 5 }
  0x42   :  { %vm1744_vm11 = vcmp.gt.s32.totalorder %v2309_v57, 7 }
  0x43   :  { %1003 = vperm.xlu0 %1890, %v1001_v9   ;;  %v834_v9 = vlaneseq }
  0x44   :  { %300 = vmatpush1.bf16.msra.mxu0 %v1932_v27  ;;  %373 = vmatpush1.bf16.msra.mxu1 %v1933_v28 }
  0x45   :  { %301 = vmatprep.subr.bf16.mxu0 %v1934_v29  ;;  %374 = vmatprep.subr.bf16.mxu1 %v1936_v30 }
  0x47   :  { %1375 = vperm.xlu0 %1890, %v1373_v10  }
  0x48   :  { %302 = vmatpush1.bf16.msra.mxu0 %v1938_v31  ;;  %375 = vmatpush1.bf16.msra.mxu1 %v1939_v32 }
  0x49   :  { %741 = vmatprep.subr.bf16.mxu0 %v2242_v33  ;;  %782 = vmatprep.subr.bf16.mxu1 %v2244_v34 }
  0x4b   :  { %320 = vmatmul.mubr.bf16.vlgmr.msra.gmra.mxu0 %v1940_v35  ;;  %393 = vmatmul.mubr.bf16.vlgmr.msra.gmra.mxu1 %v1940_v35 }
  0x4c   :  { %742 = vmatpush1.bf16.msra.mxu0 %v2246_v36  ;;  %783 = vmatpush1.bf16.msra.mxu1 %v2248_v37 }
  0x4d   :  { %743 = vmatprep.subr.bf16.mxu0 %v2252_v38  ;;  %784 = vmatprep.subr.bf16.mxu1 %v2254_v39 }
  0x4e   :  { %329 = vmatprep.mubr.bf16.mxu0 %v2849_v0  ;;  %402 = vmatprep.mubr.bf16.mxu1 %v2849_v0 }
  0x4f   :  { %1623 = vperm.xlu0 %1890, %v1621_v11  }
  0x50   :  { %744 = vmatpush1.bf16.msra.mxu0 %v2256_v40  ;;  %785 = vmatpush1.bf16.msra.mxu1 %v2260_v41 }
  0x51   :  { %745 = vmatprep.subr.bf16.mxu0 %v2264_v42  ;;  %786 = vmatprep.subr.bf16.mxu1 %v2266_v43 }
  0x53   :  { %330 = vmatmul.mubr.bf16.gmra.mxu0 %v1953_v44  ;;  %403 = vmatmul.mubr.bf16.gmra.mxu1 %v1953_v44 }
  0x54   :  { %746 = vmatpush1.bf16.msra.mxu0 %v2270_v45  ;;  %787 = vmatpush1.bf16.msra.mxu1 %v2272_v46 }
  0x55   :  { %747 = vmatprep.subr.bf16.mxu0 %v2276_v47  ;;  %788 = vmatprep.subr.bf16.mxu1 %v2280_v48 }
  0x56   :  { %339 = vmatprep.mubr.bf16.mxu0 %v2849_v0  ;;  %412 = vmatprep.mubr.bf16.mxu1 %v2849_v0 }
  0x57   :  { %1754 = vperm.xlu0 %1890, %v1752_v12  }
  0x58   :  { %748 = vmatpush1.bf16.msra.mxu0 %v2282_v49  ;;  %789 = vmatpush1.bf16.msra.mxu1 %v2284_v50 }
  0x59   :  { %749 = vmatprep.subr.bf16.mxu0 %v2288_v51  ;;  %790 = vmatprep.subr.bf16.mxu1 %v2292_v52 }
  0x5b   :  { %340 = vmatmul.mubr.bf16.gmra.mxu0 %v1966_v54  ;;  %413 = vmatmul.mubr.bf16.gmra.mxu1 %v1966_v54 }
  0x5c   :  { %750 = vmatpush1.bf16.msra.mxu0 %v2304_v55  ;;  %791 = vmatpush1.bf16.msra.mxu1 %v2306_v56 }
  0x5d   :  { %751 = vmatprep.subr.bf16.mxu0 %v2313_v58  ;;  %792 = vmatprep.subr.bf16.mxu1 %v2315_v59 }
  0x5e   :  { %349 = vmatprep.mubr.bf16.mxu0 %v2849_v0  ;;  %422 = vmatprep.mubr.bf16.mxu1 %v2849_v0 }
  0x60   :  { %752 = vmatpush1.bf16.msra.mxu0 %v2320_v60  ;;  %793 = vmatpush1.bf16.msra.mxu1 %v2322_v61 }
  0x61   :  { %753 = vmatprep.subr.bf16.mxu0 %v2327_v63  ;;  %794 = vmatprep.subr.bf16.mxu1 %v2329_v1 }
  0x63   :  { %350 = vmatmul.mubr.bf16.gmra.mxu0 %v1979_v2  ;;  %423 = vmatmul.mubr.bf16.gmra.mxu1 %v1979_v2 }
  0x64   :  { %754 = vmatpush1.bf16.msra.mxu0 %v2335_v3  ;;  %795 = vmatpush1.bf16.msra.mxu1 %v2337_v4 }
  0x65   :  { %755 = vmatprep.subr.bf16.mxu0 %v2341_v5  ;;  %796 = vmatprep.subr.bf16.mxu1 %v2343_v6 }
  0x66   :  { %773 = vmatprep.mubr.bf16.mxu0 %v2849_v0  ;;  %814 = vmatprep.mubr.bf16.mxu1 %v2849_v0 }
  0x68   :  { %756 = vmatpush1.bf16.msra.mxu0 %v2348_v7  ;;  %797 = vmatpush1.bf16.msra.mxu1 %v2350_v8 }
  0x69   :  { %885 = vmatprep.subr.bf16.mxu0 %v2242_v33  ;;  %926 = vmatprep.subr.bf16.mxu1 %v2244_v34 }
  0x6b   :  { %774 = vmatmul.mubr.bf16.vlgmr.msra.gmra.mxu0 %v2849_v0  ;;  %815 = vmatmul.mubr.bf16.vlgmr.msra.gmra.mxu1 %v2849_v0 }
  0x6c   :  { %886 = vmatpush1.bf16.msra.mxu0 %v2246_v36  ;;  %927 = vmatpush1.bf16.msra.mxu1 %v2248_v37 }
  0x6d   :  { %887 = vmatprep.subr.bf16.mxu0 %v2252_v38  ;;  %928 = vmatprep.subr.bf16.mxu1 %v2254_v39 }
  0x6e   :  { %917 = vmatprep.mubr.bf16.mxu0 %v2849_v0  ;;  %958 = vmatprep.mubr.bf16.mxu1 %v2849_v0 }
  0x70   :  { %888 = vmatpush1.bf16.msra.mxu0 %v2256_v40  ;;  %929 = vmatpush1.bf16.msra.mxu1 %v2260_v41 }
  0x71   :  { %889 = vmatprep.subr.bf16.mxu0 %v2264_v42  ;;  %930 = vmatprep.subr.bf16.mxu1 %v2266_v43 }
  0x74   :  { %890 = vmatpush1.bf16.msra.mxu0 %v2270_v45  ;;  %931 = vmatpush1.bf16.msra.mxu1 %v2272_v46 }
  0x75   :  { %891 = vmatprep.subr.bf16.mxu0 %v2276_v47  ;;  %932 = vmatprep.subr.bf16.mxu1 %v2280_v48 }
  0x78   :  { %892 = vmatpush1.bf16.msra.mxu0 %v2282_v49  ;;  %933 = vmatpush1.bf16.msra.mxu1 %v2284_v50 }
  0x79   :  { %893 = vmatprep.subr.bf16.mxu0 %v2288_v51  ;;  %934 = vmatprep.subr.bf16.mxu1 %v2292_v52 }
  0x7c   :  { %894 = vmatpush1.bf16.msra.mxu0 %v2304_v55  ;;  %935 = vmatpush1.bf16.msra.mxu1 %v2306_v56 }
  0x7d   :  { %895 = vmatprep.subr.bf16.mxu0 %v2313_v58  ;;  %936 = vmatprep.subr.bf16.mxu1 %v2315_v59 }
  0x80   :  { %896 = vmatpush1.bf16.msra.mxu0 %v2320_v60  ;;  %937 = vmatpush1.bf16.msra.mxu1 %v2322_v61 }
  0x81   :  { %897 = vmatprep.subr.bf16.mxu0 %v2327_v63  ;;  %938 = vmatprep.subr.bf16.mxu1 %v2329_v1 }
  0x84   :  { %898 = vmatpush1.bf16.msra.mxu0 %v2335_v3  ;;  %939 = vmatpush1.bf16.msra.mxu1 %v2337_v4 }
  0x85   :  { %899 = vmatprep.subr.bf16.mxu0 %v2341_v5  ;;  %940 = vmatprep.subr.bf16.mxu1 %v2343_v6 }
  0x88   :  { %900 = vmatpush1.bf16.msra.mxu0 %v2348_v7  ;;  %941 = vmatpush1.bf16.msra.mxu1 %v2350_v8 }
  0x89   :  { %1009 = vmatprep.subr.bf16.mxu0 %v2242_v33  ;;  %1050 = vmatprep.subr.bf16.mxu1 %v2244_v34 }
 0x10b   :  { %v321_v13 = vpop.f32.mrf.mxu0  ;;  %v394_v14 = vpop.f32.mrf.mxu1 }
 0x10d   :  { %v323_v15 = vpop.f32.mrf.mxu0  ;;  %v396_v16 = vpop.f32.mrf.mxu1 }
 0x10f   :  { %v325_v17 = vpop.f32.mrf.mxu0  ;;  %v398_v18 = vpop.f32.mrf.mxu1 }
 0x111   :  { %v327_v19 = vpop.f32.mrf.mxu0  ;;  %v400_v20 = vpop.f32.mrf.mxu1 }
 0x112   :  { %v2403_v21 = vpack.c.bf16 %v327_v19, %v325_v17  ;;  %v2405_v22 = vpack.c.bf16 %v400_v20, %v398_v18  ;;  %v835_v20 = vshrl.u32 %v834_v9, 7 }
 0x113   :  { %v331_v23 = vpop.f32.mrf.mxu0  ;;  %v404_v24 = vpop.f32.mrf.mxu1 }
 0x114   :  { %v840_v9 = vsub.s32 1, %v835_v20 }
 0x115   :  { %v333_v25 = vpop.f32.mrf.mxu0  ;;  %v406_v26 = vpop.f32.mrf.mxu1 }
 0x116   :  { %v2407_v27 = vpack.c.bf16 %v333_v25, %v331_v23  ;;  %v2409_v28 = vpack.c.bf16 %v406_v26, %v404_v24 }
 0x117   :  { %v335_v29 = vpop.f32.mrf.mxu0  ;;  %v408_v30 = vpop.f32.mrf.mxu1 }
 0x119   :  { %v337_v31 = vpop.f32.mrf.mxu0  ;;  %v410_v32 = vpop.f32.mrf.mxu1 }
 0x11a   :  { %v2411_v35 = vpack.c.bf16 %v337_v31, %v335_v29  ;;  %v2413_v44 = vpack.c.bf16 %v410_v32, %v408_v30  ;;  %v836_v31 = vsub.s32 0, %v835_v20  ;;  %v1865_v32 = vpack.c.bf16 %v323_v15, %v321_v13 }
 0x11b   :  { %v341_v53 = vpop.f32.mrf.mxu0  ;;  %v414_v54 = vpop.f32.mrf.mxu1 }
 0x11c   :  { %2861 = vst [vmem:[#allocation13_spill] sm:$0xff] %v2411_v35  ;;  %2862 = vst [vmem:[#allocation14_spill] sm:$0xff] %v2413_v44  ;;  %v825_v13 = vunpack.c.l.bf16 %v1865_v32 }
 0x11d   :  { %v343_v62 = vpop.f32.mrf.mxu0  ;;  %v416_v2 = vpop.f32.mrf.mxu1 }
 0x11e   :  { %v2415_v10 = vpack.c.bf16 %v343_v62, %v341_v53  ;;  %v2417_v11 = vpack.c.bf16 %v416_v2, %v414_v54  ;;  %v548_v54 = vld [vmem:[%s2847_s4] sm:$0xf]  ;;  %s2198_s4 = smov [#allocation9]  }
 0x11f   :  { %v345_v12 = vpop.f32.mrf.mxu0  ;;  %v418_v17 = vpop.f32.mrf.mxu1  ;;  %s1765_s12 = sshll.u32 %s2198_s4, 4  ;;  %s1766_s12 = int_to_ptr.vmem [resolvable:$true] %s1765_s12 }
 0x120   :  { %2863 = vst [vmem:[#allocation15_spill] sm:$0xff] %v2415_v10  ;;  %2864 = vst [vmem:[#allocation16_spill] sm:$0xff] %v2417_v11  ;;  %s2164_s13 = scalar_lea.vmem %s1766_s12, 128  ;;  %p2169_p2 = scmp.lt.s32.totalorder %s1766_s12, %s1766_s12 }
 0x121   :  { %v347_v18 = vpop.f32.mrf.mxu0  ;;  %v420_v19 = vpop.f32.mrf.mxu1  ;;  %p2165_p1 = scmp.ne.s32.totalorder %s1766_s12, %s2164_s13  ;;  %p2170_p3 = scmp.lt.s32.totalorder %s2164_s13, %s2164_s13 }
 0x122   :  { %v2419_v23 = vpack.c.bf16 %v347_v18, %v345_v12  ;;  %v2421_v24 = vpack.c.bf16 %v420_v19, %v418_v17  ;;  %v2430_v18 = vrot.slane %v548_v54, %v836_v31  ;;  %v1866_v19 = vpack.c.bf16 %v396_v16, %v394_v14 }
 0x123   :  { %v351_v25 = vpop.f32.mrf.mxu0  ;;  %v424_v26 = vpop.f32.mrf.mxu1  ;;  %p2171_p4 = por %p2170_p3, %p2169_p2 }
 0x124   :  { %2865 = vst [vmem:[#allocation17_spill] sm:$0xff] %v2419_v23  ;;  %2866 = vst [vmem:[#allocation18_spill] sm:$0xff] %v2421_v24  ;;  %v827_v44 = vunpack.c.l.bf16 %v1866_v19 }
 0x125   :  { %v353_v29 = vpop.f32.mrf.mxu0  ;;  %v426_v30 = vpop.f32.mrf.mxu1  ;;  %p2172_p5 = pnand %p2171_p4, %p2165_p1 }
 0x126   :  { %v2423_v0 = vpack.c.bf16 %v353_v29, %v351_v25  ;;  %v2425_v53 = vpack.c.bf16 %v426_v30, %v424_v26  ;;  %v844_v29 = vsub.s32 2, %v835_v20  ;;  %v826_v30 = vunpack.c.h.bf16 %v1865_v32 }
 0x127   :  { %v355_v62 = vpop.f32.mrf.mxu0  ;;  %v428_v2 = vpop.f32.mrf.mxu1 }
 0x128   :  { %2867 = vst [vmem:[#allocation19_spill] sm:$0xff] %v2423_v0  ;;  %2868 = vst [vmem:[#allocation20_spill] sm:$0xff] %v2425_v53  ;;  %v2436_v53 = vrot.slane %v548_v54, %v840_v9  ;;  %v848_v9 = vsub.s32 3, %v835_v20 }
 0x129   :  { %v357_v12 = vpop.f32.mrf.mxu0  ;;  %v430_v17 = vpop.f32.mrf.mxu1 }
 0x12a   :  { %v2432_v24 = vpack.c.bf16 %v357_v12, %v355_v62  ;;  %v2434_v23 = vpack.c.bf16 %v430_v17, %v428_v2  ;;  %v2439_v2 = vrot.slane %v548_v54, %v844_v29 }
 0x12b   :  { %v775_v15 = vpop.f32.mrf.mxu0  ;;  %v816_v25 = vpop.f32.mrf.mxu1 }
 0x12c   :  { %2869 = vst [vmem:[#allocation21_spill] sm:$0xff] %v2432_v24  ;;  %2870 = vst [vmem:[#allocation22_spill] sm:$0xff] %v2434_v23  ;;  %v829_v26 = vadd.f32 %v825_v13, %v775_v15  ;;  %v831_v62 = vadd.f32 %v827_v44, %v816_v25  ;;  %v828_v23 = vunpack.c.h.bf16 %v1866_v19  ;;  %v2443_v24 = vrot.slane %v548_v54, %v848_v9  ;;  %v2449_v54 = vpop.permute.xlu0 %879 }
 0x12d   :  { %v777_v0 = vpop.f32.mrf.mxu0  ;;  %v818_v11 = vpop.f32.mrf.mxu1  ;;  %vm881_vm6 = vcmp.eq.s32.totalorder %v2449_v54, 1  ;;  %v1094_v54 = vunpack.c.l.bf16 %v2407_v27 }
 0x12e   :  { %v854_v10 = vadd.f32 %v2430_v18, %v829_v26  ;;  %v830_v31 = vadd.f32 %v826_v30, %v777_v0  ;;  %v856_v15 = vadd.f32 %v2439_v2, %v831_v62  ;;  %v832_v26 = vadd.f32 %v828_v23, %v818_v11  ;;  %vm1859_vm7 = vmpackc.low %vm881_vm6, %vm881_vm6 }
 0x12f   :  { %v779_v35 = vpop.f32.mrf.mxu0  ;;  %v820_v14 = vpop.f32.mrf.mxu1 }
 0x130   :  { %v858_v16 = vmul.f32 0.5, %v854_v10  ;;  %v855_v12 = vadd.f32 %v2436_v53, %v830_v31  ;;  %v857_v0 = vadd.f32 %v2443_v24, %v832_v26 }
 0x131   :  { %v780_v17 = vpop.f32.mrf.mxu0  ;;  %v821_v13 = vpop.f32.mrf.mxu1 }
 0x132   :  { %1992 = vtanh.f32 %v858_v16  ;;  %v862_v32 = vmul.f32 0.5, %v855_v12  ;;  %v867_v35 = vmul.f32 0.5, %v857_v0 }
 0x134   :  { %1994 = vtanh.f32 %v862_v32  ;;  %v2871_v32 = vmov 0  }
 0x135   :  { %1996 = vtanh.f32 %v856_v15  ;;  %v1125_v9 = vsel %vm1124_vm8, 1, %v2871_v32  ;;  %v1249_v15 = vsel %vm1248_vm9, 1, %v2871_v32  ;;  %v1497_v26 = vsel %vm1496_vm10, 1, %v2871_v32 }
 0x136   :  { %1998 = vtanh.f32 %v867_v35  ;;  %1127 = vperm.xlu1 %1891, %v1125_v9   ;;  %v1745_v0 = vsel %vm1744_vm11, 1, %v2871_v32  ;;  %v970_v35 = vunpack.c.l.bf16 %v2403_v21 }
 0x13a   :  { %1251 = vperm.xlu1 %1891, %v1249_v15  }
 0x13e   :  { %1499 = vperm.xlu1 %1891, %v1497_v26  }
 0x13f   :  { %v1993_v44 = vpop.eup %1992 }
 0x140   :  { %v860_v10 = vmul.f32 0.5, %v1993_v44 }
 0x141   :  { %v1995_v25 = vpop.eup %1994 }
 0x142   :  { %v861_v29 = vadd.f32 0.5, %v860_v10  ;;  %v864_v30 = vmul.f32 0.5, %v1995_v25  ;;  %v1997_v14 = vpop.eup %1996  ;;  %1747 = vperm.xlu1 %1891, %v1745_v0  }
 0x143   :  { %v1999_v11 = vpop.eup %1998 }
 0x144   :  { %v865_v31 = vadd.f32 0.5, %v864_v30  ;;  %v872_v16 = vmul.f32 %v1997_v14, %v861_v29  ;;  %v869_v23 = vmul.f32 0.5, %v1999_v11  ;;  %v972_v29 = vunpack.c.l.bf16 %v2405_v22 }
 0x145   :  { %v971_v30 = vunpack.c.h.bf16 %v2403_v21  ;;  %v973_v21 = vunpack.c.h.bf16 %v2405_v22  ;;  %v1004_v22 = vpop.permute.xlu0 %1003 }
 0x146   :  { %v871_v20 = vmul.f32 0.0, %v865_v31  ;;  %v870_v19 = vadd.f32 0.5, %v869_v23  ;;  %vm1005_vm12 = vcmp.eq.s32.totalorder %v1004_v22, 1 }
 0x148   :  { %v2446_v62 = vadd.f32 %v872_v16, %v871_v20 }
 0x14a   :  { %2000 = vtanh.f32 %v2446_v62 }
 0x157   :  { %v2001_v12 = vpop.eup %2000 }
 0x158   :  { %v2451_v17 = vmul.f32 %v2001_v12, %v870_v19 }
 0x15a   :  { %v1860_v13 = vpack.c.bf16 %v2451_v17, %v2451_v17 }
 0x15c   :  { %1861 = vmatmul.mubr.msk.bf16.vlgmr.msra.gmra.mxu0 %vm1859_vm7, %v1860_v13  ;;  %1864 = vmatmul.mubr.msk.bf16.vlgmr.msra.gmra.mxu1 %vm1859_vm7, %v1860_v13 }
 0x15d   :  { %1010 = vmatpush1.bf16.msra.mxu0 %v2246_v36  ;;  %1051 = vmatpush1.bf16.msra.mxu1 %v2248_v37 }
 0x15e   :  { %1011 = vmatprep.subr.bf16.mxu0 %v2252_v38  ;;  %1052 = vmatprep.subr.bf16.mxu1 %v2254_v39 }
 0x15f   :  { %1041 = vmatprep.mubr.bf16.mxu0 %v2871_v32  ;;  %1082 = vmatprep.mubr.bf16.mxu1 %v2871_v32 }
 0x161   :  { %1012 = vmatpush1.bf16.msra.mxu0 %v2256_v40  ;;  %1053 = vmatpush1.bf16.msra.mxu1 %v2260_v41 }
 0x162   :  { %1013 = vmatprep.subr.bf16.mxu0 %v2264_v42  ;;  %1054 = vmatprep.subr.bf16.mxu1 %v2266_v43 }
 0x165   :  { %1014 = vmatpush1.bf16.msra.mxu0 %v2270_v45  ;;  %1055 = vmatpush1.bf16.msra.mxu1 %v2272_v46 }
 0x166   :  { %1015 = vmatprep.subr.bf16.mxu0 %v2276_v47  ;;  %1056 = vmatprep.subr.bf16.mxu1 %v2280_v48 }
 0x169   :  { %1016 = vmatpush1.bf16.msra.mxu0 %v2282_v49  ;;  %1057 = vmatpush1.bf16.msra.mxu1 %v2284_v50 }
 0x16a   :  { %1017 = vmatprep.subr.bf16.mxu0 %v2288_v51  ;;  %1058 = vmatprep.subr.bf16.mxu1 %v2292_v52 }
 0x16d   :  { %1018 = vmatpush1.bf16.msra.mxu0 %v2304_v55  ;;  %1059 = vmatpush1.bf16.msra.mxu1 %v2306_v56 }
 0x16e   :  { %1019 = vmatprep.subr.bf16.mxu0 %v2313_v58  ;;  %1060 = vmatprep.subr.bf16.mxu1 %v2315_v59 }
 0x171   :  { %1020 = vmatpush1.bf16.msra.mxu0 %v2320_v60  ;;  %1061 = vmatpush1.bf16.msra.mxu1 %v2322_v61 }
 0x172   :  { %1021 = vmatprep.subr.bf16.mxu0 %v2327_v63  ;;  %1062 = vmatprep.subr.bf16.mxu1 %v2329_v1 }
 0x175   :  { %1022 = vmatpush1.bf16.msra.mxu0 %v2335_v3  ;;  %1063 = vmatpush1.bf16.msra.mxu1 %v2337_v4 }
 0x176   :  { %1023 = vmatprep.subr.bf16.mxu0 %v2341_v5  ;;  %1064 = vmatprep.subr.bf16.mxu1 %v2343_v6 }
 0x179   :  { %1024 = vmatpush1.bf16.msra.mxu0 %v2348_v7  ;;  %1065 = vmatpush1.bf16.msra.mxu1 %v2350_v8 }
 0x17a   :  { %1133 = vmatprep.subr.bf16.mxu0 %v2242_v33  ;;  %1174 = vmatprep.subr.bf16.mxu1 %v2244_v34 }
 0x21c   :  { %v919_v44 = vpop.f32.mrf.mxu0  ;;  %v960_v10 = vpop.f32.mrf.mxu1 }
 0x21d   :  { %v974_v25 = vadd.f32 %v970_v35, %v919_v44  ;;  %v976_v16 = vadd.f32 %v972_v29, %v960_v10 }
 0x21e   :  { %v921_v31 = vpop.f32.mrf.mxu0  ;;  %v962_v14 = vpop.f32.mrf.mxu1 }
 0x21f   :  { %v978_v20 = vadd.f32 %v974_v25, %v2430_v18  ;;  %v975_v11 = vadd.f32 %v971_v30, %v921_v31  ;;  %v980_v15 = vadd.f32 %v976_v16, %v2439_v2  ;;  %v977_v0 = vadd.f32 %v973_v21, %v962_v14 }
 0x220   :  { %v923_v57 = vpop.f32.mrf.mxu0  ;;  %v964_v23 = vpop.f32.mrf.mxu1  ;;  %v883_v16 = vsel %vm881_vm6, %v2446_v62, 0.0  ;;  %v882_v21 = vsel %vm881_vm6, %v2451_v17, 0.0 }
 0x221   :  { %v982_v19 = vmul.f32 0.5, %v978_v20  ;;  %v979_v12 = vadd.f32 %v975_v11, %v2436_v53  ;;  %v981_v35 = vadd.f32 %v977_v0, %v2443_v24 }
 0x222   :  { %v924_v13 = vpop.f32.mrf.mxu0  ;;  %v965_v9 = vpop.f32.mrf.mxu1 }
 0x223   :  { %2002 = vtanh.f32 %v982_v19  ;;  %v986_v26 = vmul.f32 0.5, %v979_v12  ;;  %v991_v44 = vmul.f32 0.5, %v981_v35 }
 0x225   :  { %2004 = vtanh.f32 %v986_v26 }
 0x226   :  { %2006 = vtanh.f32 %v980_v15 }
 0x227   :  { %2008 = vtanh.f32 %v991_v44 }
 0x230   :  { %v2003_v10 = vpop.eup %2002 }
 0x231   :  { %v984_v25 = vmul.f32 0.5, %v2003_v10  ;;  %v1096_v10 = vunpack.c.l.bf16 %v2409_v28 }
 0x232   :  { %v2005_v29 = vpop.eup %2004 }
 0x233   :  { %v985_v30 = vadd.f32 0.5, %v984_v25  ;;  %v988_v31 = vmul.f32 0.5, %v2005_v29  ;;  %v2007_v20 = vpop.eup %2006  ;;  %v1095_v25 = vunpack.c.h.bf16 %v2407_v27  ;;  %v1097_v27 = vunpack.c.h.bf16 %v2409_v28 }
 0x234   :  { %v2009_v12 = vpop.eup %2008 }
 0x235   :  { %v989_v11 = vadd.f32 0.5, %v988_v31  ;;  %v996_v57 = vmul.f32 %v2007_v20, %v985_v30  ;;  %v993_v13 = vmul.f32 0.5, %v2009_v12 }
 0x237   :  { %v995_v23 = vmul.f32 %v989_v11, %v883_v16  ;;  %v994_v9 = vadd.f32 0.5, %v993_v13 }
 0x239   :  { %v997_v19 = vadd.f32 %v996_v57, %v995_v23 }
 0x23b   :  { %2010 = vtanh.f32 %v997_v19  ;;  %v2512_v14 = vsel %vm1005_vm12, %v997_v19, %v883_v16 }
 0x248   :  { %v2011_v15 = vpop.eup %2010 }
 0x249   :  { %v999_v26 = vmul.f32 %v2011_v15, %v994_v9 }
 0x24b   :  { %v2517_v0 = vsel %vm1005_vm12, %v999_v26, %v882_v21 }
 0x24c   :  { %v1008_v62 = vpack.c.bf16 %v2517_v0, %v2517_v0 }
 0x24e   :  { %1042 = vmatmul.mubr.bf16.vlgmr.msra.gmra.mxu0 %v1008_v62  ;;  %1083 = vmatmul.mubr.bf16.vlgmr.msra.gmra.mxu1 %v1008_v62 }
 0x24f   :  { %1134 = vmatpush1.bf16.msra.mxu0 %v2246_v36  ;;  %1175 = vmatpush1.bf16.msra.mxu1 %v2248_v37 }
 0x250   :  { %1135 = vmatprep.subr.bf16.mxu0 %v2252_v38  ;;  %1176 = vmatprep.subr.bf16.mxu1 %v2254_v39 }
 0x251   :  { %1165 = vmatprep.mubr.bf16.mxu0 %v2871_v32  ;;  %1206 = vmatprep.mubr.bf16.mxu1 %v2871_v32 }
 0x253   :  { %1136 = vmatpush1.bf16.msra.mxu0 %v2256_v40  ;;  %1177 = vmatpush1.bf16.msra.mxu1 %v2260_v41 }
 0x254   :  { %1137 = vmatprep.subr.bf16.mxu0 %v2264_v42  ;;  %1178 = vmatprep.subr.bf16.mxu1 %v2266_v43 }
 0x257   :  { %1138 = vmatpush1.bf16.msra.mxu0 %v2270_v45  ;;  %1179 = vmatpush1.bf16.msra.mxu1 %v2272_v46 }
 0x258   :  { %1139 = vmatprep.subr.bf16.mxu0 %v2276_v47  ;;  %1180 = vmatprep.subr.bf16.mxu1 %v2280_v48 }
 0x25b   :  { %1140 = vmatpush1.bf16.msra.mxu0 %v2282_v49  ;;  %1181 = vmatpush1.bf16.msra.mxu1 %v2284_v50 }
 0x25c   :  { %1141 = vmatprep.subr.bf16.mxu0 %v2288_v51  ;;  %1182 = vmatprep.subr.bf16.mxu1 %v2292_v52 }
 0x25f   :  { %1142 = vmatpush1.bf16.msra.mxu0 %v2304_v55  ;;  %1183 = vmatpush1.bf16.msra.mxu1 %v2306_v56 }
 0x260   :  { %1143 = vmatprep.subr.bf16.mxu0 %v2313_v58  ;;  %1184 = vmatprep.subr.bf16.mxu1 %v2315_v59 }
 0x263   :  { %1144 = vmatpush1.bf16.msra.mxu0 %v2320_v60  ;;  %1185 = vmatpush1.bf16.msra.mxu1 %v2322_v61 }
 0x264   :  { %1145 = vmatprep.subr.bf16.mxu0 %v2327_v63  ;;  %1186 = vmatprep.subr.bf16.mxu1 %v2329_v1 }
 0x267   :  { %1146 = vmatpush1.bf16.msra.mxu0 %v2335_v3  ;;  %1187 = vmatpush1.bf16.msra.mxu1 %v2337_v4 }
 0x268   :  { %1147 = vmatprep.subr.bf16.mxu0 %v2341_v5  ;;  %1188 = vmatprep.subr.bf16.mxu1 %v2343_v6 }
 0x26b   :  { %1148 = vmatpush1.bf16.msra.mxu0 %v2348_v7  ;;  %1189 = vmatpush1.bf16.msra.mxu1 %v2350_v8 }
 0x26c   :  { %1257 = vmatprep.subr.bf16.mxu0 %v2242_v33  ;;  %1298 = vmatprep.subr.bf16.mxu1 %v2244_v34 }
 0x30e   :  { %v1043_v17 = vpop.f32.mrf.mxu0  ;;  %v1084_v35 = vpop.f32.mrf.mxu1 }
 0x30f   :  { %v1098_v44 = vadd.f32 %v1094_v54, %v1043_v17  ;;  %v1100_v20 = vadd.f32 %v1096_v10, %v1084_v35 }
 0x310   :  { %v1045_v29 = vpop.f32.mrf.mxu0  ;;  %v1086_v30 = vpop.f32.mrf.mxu1 }
 0x311   :  { %v1102_v31 = vadd.f32 %v1098_v44, %v2430_v18  ;;  %v1099_v11 = vadd.f32 %v1095_v25, %v1045_v29  ;;  %v1104_v13 = vadd.f32 %v1100_v20, %v2439_v2  ;;  %v1101_v15 = vadd.f32 %v1097_v27, %v1086_v30  ;;  %v1128_v29 = vpop.permute.xlu1 %1127 }
 0x312   :  { %v1047_v57 = vpop.f32.mrf.mxu0  ;;  %v1088_v16 = vpop.f32.mrf.mxu1  ;;  %vm1129_vm13 = vcmp.eq.s32.totalorder %v1128_v29, 1 }
 0x313   :  { %v1106_v23 = vmul.f32 0.5, %v1102_v31  ;;  %v1103_v22 = vadd.f32 %v1099_v11, %v2436_v53  ;;  %v1105_v26 = vadd.f32 %v1101_v15, %v2443_v24 }
 0x314   :  { %v1048_v19 = vpop.f32.mrf.mxu0  ;;  %v1089_v12 = vpop.f32.mrf.mxu1 }
 0x315   :  { %2012 = vtanh.f32 %v1106_v23  ;;  %v1110_v9 = vmul.f32 0.5, %v1103_v22  ;;  %v1115_v21 = vmul.f32 0.5, %v1105_v26 }
 0x317   :  { %2014 = vtanh.f32 %v1110_v9 }
 0x318   :  { %2016 = vtanh.f32 %v1104_v13 }
 0x319   :  { %2018 = vtanh.f32 %v1115_v21 }
 0x322   :  { %v2013_v62 = vpop.eup %2012 }
 0x323   :  { %v1108_v54 = vmul.f32 0.5, %v2013_v62 }
 0x324   :  { %v2015_v17 = vpop.eup %2014 }
 0x325   :  { %v1109_v35 = vadd.f32 0.5, %v1108_v54  ;;  %v1112_v44 = vmul.f32 0.5, %v2015_v17  ;;  %v2017_v10 = vpop.eup %2016 }
 0x326   :  { %v2019_v30 = vpop.eup %2018 }
 0x327   :  { %v1113_v25 = vadd.f32 0.5, %v1112_v44  ;;  %v1120_v31 = vmul.f32 %v2017_v10, %v1109_v35  ;;  %v1117_v57 = vmul.f32 0.5, %v2019_v30 }
 0x329   :  { %v1119_v20 = vmul.f32 %v1113_v25, %v2512_v14  ;;  %v1118_v16 = vadd.f32 0.5, %v1117_v57 }
 0x32b   :  { %v1121_v11 = vadd.f32 %v1120_v31, %v1119_v20 }
 0x32d   :  { %2020 = vtanh.f32 %v1121_v11  ;;  %v2565_v28 = vsel %vm1129_vm13, %v1121_v11, %v2512_v14 }
 0x33a   :  { %v2021_v23 = vpop.eup %2020 }
 0x33b   :  { %v1123_v22 = vmul.f32 %v2021_v23, %v1118_v16  ;;  %v1252_v23 = vpop.permute.xlu1 %1251 }
 0x33c   :  { %vm1253_vm14 = vcmp.eq.s32.totalorder %v1252_v23, 1 }
 0x33d   :  { %v2568_v19 = vsel %vm1129_vm13, %v1123_v22, %v2517_v0 }
 0x33e   :  { %v1132_v12 = vpack.c.bf16 %v2568_v19, %v2568_v19 }
 0x340   :  { %1166 = vmatmul.mubr.bf16.vlgmr.msra.gmra.mxu0 %v1132_v12  ;;  %1207 = vmatmul.mubr.bf16.vlgmr.msra.gmra.mxu1 %v1132_v12 }
 0x341   :  { %1258 = vmatpush1.bf16.msra.mxu0 %v2246_v36  ;;  %1299 = vmatpush1.bf16.msra.mxu1 %v2248_v37  ;;  %v2872_v36 = vld [vmem:[#allocation13_spill] sm:$0xff] }
 0x342   :  { %1259 = vmatprep.subr.bf16.mxu0 %v2252_v38  ;;  %1300 = vmatprep.subr.bf16.mxu1 %v2254_v39  ;;  %v1218_v37 = vunpack.c.l.bf16 %v2872_v36 }
 0x343   :  { %1289 = vmatprep.mubr.bf16.mxu0 %v2871_v32  ;;  %1330 = vmatprep.mubr.bf16.mxu1 %v2871_v32 }
 0x345   :  { %1260 = vmatpush1.bf16.msra.mxu0 %v2256_v40  ;;  %1301 = vmatpush1.bf16.msra.mxu1 %v2260_v41  ;;  %v2873_v41 = vld [vmem:[#allocation14_spill] sm:$0xff] }
 0x346   :  { %1261 = vmatprep.subr.bf16.mxu0 %v2264_v42  ;;  %1302 = vmatprep.subr.bf16.mxu1 %v2266_v43  ;;  %v1220_v42 = vunpack.c.l.bf16 %v2873_v41  ;;  %v1219_v43 = vunpack.c.h.bf16 %v2872_v36  ;;  %v1221_v54 = vunpack.c.h.bf16 %v2873_v41 }
 0x349   :  { %1262 = vmatpush1.bf16.msra.mxu0 %v2270_v45  ;;  %1303 = vmatpush1.bf16.msra.mxu1 %v2272_v46 }
 0x34a   :  { %1263 = vmatprep.subr.bf16.mxu0 %v2276_v47  ;;  %1304 = vmatprep.subr.bf16.mxu1 %v2280_v48 }
 0x34d   :  { %1264 = vmatpush1.bf16.msra.mxu0 %v2282_v49  ;;  %1305 = vmatpush1.bf16.msra.mxu1 %v2284_v50 }
 0x34e   :  { %1265 = vmatprep.subr.bf16.mxu0 %v2288_v51  ;;  %1306 = vmatprep.subr.bf16.mxu1 %v2292_v52 }
 0x351   :  { %1266 = vmatpush1.bf16.msra.mxu0 %v2304_v55  ;;  %1307 = vmatpush1.bf16.msra.mxu1 %v2306_v56 }
 0x352   :  { %1267 = vmatprep.subr.bf16.mxu0 %v2313_v58  ;;  %1308 = vmatprep.subr.bf16.mxu1 %v2315_v59 }
 0x355   :  { %1268 = vmatpush1.bf16.msra.mxu0 %v2320_v60  ;;  %1309 = vmatpush1.bf16.msra.mxu1 %v2322_v61 }
 0x356   :  { %1269 = vmatprep.subr.bf16.mxu0 %v2327_v63  ;;  %1310 = vmatprep.subr.bf16.mxu1 %v2329_v1 }
 0x359   :  { %1270 = vmatpush1.bf16.msra.mxu0 %v2335_v3  ;;  %1311 = vmatpush1.bf16.msra.mxu1 %v2337_v4 }
 0x35a   :  { %1271 = vmatprep.subr.bf16.mxu0 %v2341_v5  ;;  %1312 = vmatprep.subr.bf16.mxu1 %v2343_v6 }
 0x35d   :  { %1272 = vmatpush1.bf16.msra.mxu0 %v2348_v7  ;;  %1313 = vmatpush1.bf16.msra.mxu1 %v2350_v8 }
 0x35e   :  { %1381 = vmatprep.subr.bf16.mxu0 %v2242_v33  ;;  %1422 = vmatprep.subr.bf16.mxu1 %v2244_v34 }
 0x400   :  { %v1167_v38 = vpop.f32.mrf.mxu0  ;;  %v1208_v39 = vpop.f32.mrf.mxu1 }
 0x401   :  { %v1222_v40 = vadd.f32 %v1218_v37, %v1167_v38  ;;  %v1224_v0 = vadd.f32 %v1220_v42, %v1208_v39 }
 0x402   :  { %v1169_v45 = vpop.f32.mrf.mxu0  ;;  %v1210_v46 = vpop.f32.mrf.mxu1 }
 0x403   :  { %v1226_v14 = vadd.f32 %v1222_v40, %v2430_v18  ;;  %v1223_v13 = vadd.f32 %v1219_v43, %v1169_v45  ;;  %v1228_v21 = vadd.f32 %v1224_v0, %v2439_v2  ;;  %v1225_v17 = vadd.f32 %v1221_v54, %v1210_v46  ;;  %v2623_v43 = vld [vmem:[#allocation8 + $0xe0] ss:$16 sps:$4 sm:$0xff]   ;;  %v2626_v45 = vld [vmem:[#allocation8 + $0xe8] ss:$16 sps:$4 sm:$0xff]   ;;  %v2632_v46 = vld [vmem:[#allocation8 + $0xcc] ss:$16 sps:$4 sm:$0xff]  }
 0x404   :  { %v1171_v9 = vpop.f32.mrf.mxu0  ;;  %v1212_v27 = vpop.f32.mrf.mxu1  ;;  %v2643_v0 = vld [vmem:[#allocation8 + $0xa4] ss:$16 sps:$4 sm:$0xff]  }
 0x405   :  { %v1230_v33 = vmul.f32 0.5, %v1226_v14  ;;  %v1227_v34 = vadd.f32 %v1223_v13, %v2436_v53  ;;  %v1229_v35 = vadd.f32 %v1225_v17, %v2443_v24  ;;  %v2640_v14 = vld [vmem:[#allocation8 + $0xc8] ss:$16 sps:$4 sm:$0xff]   ;;  %v2646_v13 = vld [vmem:[#allocation8 + $0xac] ss:$16 sps:$4 sm:$0xff]  }
 0x406   :  { %v1172_v15 = vpop.f32.mrf.mxu0  ;;  %v1213_v26 = vpop.f32.mrf.mxu1  ;;  %v2649_v9 = vld [vmem:[#allocation8 + $0xa0] ss:$16 sps:$4 sm:$0xff]   ;;  %v2652_v27 = vld [vmem:[#allocation8 + $0xa8] ss:$16 sps:$4 sm:$0xff]  }
 0x407   :  { %2022 = vtanh.f32 %v1230_v33  ;;  %v1234_v62 = vmul.f32 0.5, %v1227_v34  ;;  %v1239_v44 = vmul.f32 0.5, %v1229_v35 }
 0x409   :  { %2024 = vtanh.f32 %v1234_v62 }
 0x40a   :  { %2026 = vtanh.f32 %v1228_v21 }
 0x40b   :  { %2028 = vtanh.f32 %v1239_v44 }
 0x414   :  { %v2023_v10 = vpop.eup %2022 }
 0x415   :  { %v1232_v25 = vmul.f32 0.5, %v2023_v10 }
 0x416   :  { %v2025_v29 = vpop.eup %2024 }
 0x417   :  { %v1233_v31 = vadd.f32 0.5, %v1232_v25  ;;  %v1236_v20 = vmul.f32 0.5, %v2025_v29  ;;  %v2027_v11 = vpop.eup %2026 }
 0x418   :  { %v2029_v36 = vpop.eup %2028 }
 0x419   :  { %v1237_v30 = vadd.f32 0.5, %v1236_v20  ;;  %v1244_v57 = vmul.f32 %v2027_v11, %v1233_v31  ;;  %v1241_v37 = vmul.f32 0.5, %v2029_v36 }
 0x41b   :  { %v1243_v16 = vmul.f32 %v1237_v30, %v2565_v28  ;;  %v1242_v38 = vadd.f32 0.5, %v1241_v37  ;;  %v1376_v30 = vpop.permute.xlu0 %1375 }
 0x41c   :  { %vm1377_vm15 = vcmp.eq.s32.totalorder %v1376_v30, 1 }
 0x41d   :  { %v1245_v22 = vadd.f32 %v1244_v57, %v1243_v16 }
 0x41f   :  { %2030 = vtanh.f32 %v1245_v22  ;;  %v2616_v12 = vsel %vm1253_vm14, %v1245_v22, %v2565_v28  ;;  %v2629_v28 = vld [vmem:[#allocation8 + $0xc4] ss:$16 sps:$4 sm:$0xff]  }
 0x42c   :  { %v2031_v39 = vpop.eup %2030 }
 0x42d   :  { %v1247_v40 = vmul.f32 %v2031_v39, %v1242_v38 }
 0x42f   :  { %v2619_v41 = vsel %vm1253_vm14, %v1247_v40, %v2568_v19  ;;  %v2637_v19 = vld [vmem:[#allocation8 + $0xc0] ss:$16 sps:$4 sm:$0xff]  }
 0x430   :  { %v1256_v42 = vpack.c.bf16 %v2619_v41, %v2619_v41 }
 0x432   :  { %1290 = vmatmul.mubr.bf16.vlgmr.msra.gmra.mxu0 %v1256_v42  ;;  %1331 = vmatmul.mubr.bf16.vlgmr.msra.gmra.mxu1 %v1256_v42  ;;  %v2716_v42 = vld [vmem:[#allocation8 + $0x80] ss:$16 sps:$4 sm:$0xff]  }
 0x433   :  { %1382 = vmatpush1.bf16.msra.mxu0 %v2623_v43  ;;  %1423 = vmatpush1.bf16.msra.mxu1 %v2626_v45 }
 0x434   :  { %1383 = vmatprep.subr.bf16.mxu0 %v2629_v28  ;;  %1424 = vmatprep.subr.bf16.mxu1 %v2632_v46 }
 0x435   :  { %1413 = vmatprep.mubr.bf16.mxu0 %v2871_v32  ;;  %1454 = vmatprep.mubr.bf16.mxu1 %v2871_v32 }
 0x437   :  { %1384 = vmatpush1.bf16.msra.mxu0 %v2637_v19  ;;  %1425 = vmatpush1.bf16.msra.mxu1 %v2640_v14 }
 0x438   :  { %1385 = vmatprep.subr.bf16.mxu0 %v2643_v0  ;;  %1426 = vmatprep.subr.bf16.mxu1 %v2646_v13 }
 0x43b   :  { %1386 = vmatpush1.bf16.msra.mxu0 %v2649_v9  ;;  %1427 = vmatpush1.bf16.msra.mxu1 %v2652_v27 }
 0x43c   :  { %1387 = vmatprep.subr.bf16.mxu0 %v2276_v47  ;;  %1428 = vmatprep.subr.bf16.mxu1 %v2280_v48  ;;  %v2675_v47 = vld [vmem:[#allocation8 + $0xe4] ss:$16 sps:$4 sm:$0xff]   ;;  %v2678_v48 = vld [vmem:[#allocation8 + $0xec] ss:$16 sps:$4 sm:$0xff]  }
 0x43f   :  { %1388 = vmatpush1.bf16.msra.mxu0 %v2282_v49  ;;  %1429 = vmatpush1.bf16.msra.mxu1 %v2284_v50  ;;  %v2874_v49 = vld [vmem:[#allocation15_spill] sm:$0xff] }
 0x440   :  { %1389 = vmatprep.subr.bf16.mxu0 %v2288_v51  ;;  %1430 = vmatprep.subr.bf16.mxu1 %v2292_v52  ;;  %v1342_v50 = vunpack.c.l.bf16 %v2874_v49 }
 0x443   :  { %1390 = vmatpush1.bf16.msra.mxu0 %v2304_v55  ;;  %1431 = vmatpush1.bf16.msra.mxu1 %v2306_v56  ;;  %v2875_v56 = vld [vmem:[#allocation16_spill] sm:$0xff] }
 0x444   :  { %1391 = vmatprep.subr.bf16.mxu0 %v2313_v58  ;;  %1432 = vmatprep.subr.bf16.mxu1 %v2315_v59  ;;  %v1344_v58 = vunpack.c.l.bf16 %v2875_v56  ;;  %v1343_v59 = vunpack.c.h.bf16 %v2874_v49  ;;  %v1345_v26 = vunpack.c.h.bf16 %v2875_v56  ;;  %v2719_v49 = vld [vmem:[#allocation8 + $0x88] ss:$16 sps:$4 sm:$0xff]   ;;  %v2734_v56 = vld [vmem:[#allocation8 + $0x44] ss:$16 sps:$4 sm:$0xff]  }
 0x447   :  { %1392 = vmatpush1.bf16.msra.mxu0 %v2320_v60  ;;  %1433 = vmatpush1.bf16.msra.mxu1 %v2322_v61 }
 0x448   :  { %1393 = vmatprep.subr.bf16.mxu0 %v2327_v63  ;;  %1434 = vmatprep.subr.bf16.mxu1 %v2329_v1 }
 0x44b   :  { %1394 = vmatpush1.bf16.msra.mxu0 %v2335_v3  ;;  %1435 = vmatpush1.bf16.msra.mxu1 %v2337_v4 }
 0x44c   :  { %1395 = vmatprep.subr.bf16.mxu0 %v2341_v5  ;;  %1436 = vmatprep.subr.bf16.mxu1 %v2343_v6 }
 0x44f   :  { %1396 = vmatpush1.bf16.msra.mxu0 %v2348_v7  ;;  %1437 = vmatpush1.bf16.msra.mxu1 %v2350_v8 }
 0x450   :  { %1505 = vmatprep.subr.bf16.mxu0 %v2675_v47  ;;  %1546 = vmatprep.subr.bf16.mxu1 %v2678_v48 }
 0x4f2   :  { %v1291_v51 = vpop.f32.mrf.mxu0  ;;  %v1332_v52 = vpop.f32.mrf.mxu1 }
 0x4f3   :  { %v1346_v55 = vadd.f32 %v1342_v50, %v1291_v51  ;;  %v1348_v1 = vadd.f32 %v1344_v58, %v1332_v52  ;;  %v2722_v50 = vld [vmem:[#allocation8 + $0x64] ss:$16 sps:$4 sm:$0xff]   ;;  %v2725_v51 = vld [vmem:[#allocation8 + $0x6c] ss:$16 sps:$4 sm:$0xff]   ;;  %v2728_v52 = vld [vmem:[#allocation8 + $0x60] ss:$16 sps:$4 sm:$0xff]  }
 0x4f4   :  { %v1293_v60 = vpop.f32.mrf.mxu0  ;;  %v1334_v61 = vpop.f32.mrf.mxu1  ;;  %v2737_v58 = vld [vmem:[#allocation8 + $0x4c] ss:$16 sps:$4 sm:$0xff]  }
 0x4f5   :  { %v1350_v63 = vadd.f32 %v1346_v55, %v2430_v18  ;;  %v1347_v3 = vadd.f32 %v1343_v59, %v1293_v60  ;;  %v1352_v34 = vadd.f32 %v1348_v1, %v2439_v2  ;;  %v1349_v21 = vadd.f32 %v1345_v26, %v1334_v61  ;;  %v2731_v55 = vld [vmem:[#allocation8 + $0x68] ss:$16 sps:$4 sm:$0xff]   ;;  %v2740_v59 = vld [vmem:[#allocation8 + $0x40] ss:$16 sps:$4 sm:$0xff]   ;;  %v2746_v61 = vld [vmem:[#allocation8 + $0x24] ss:$16 sps:$4 sm:$0xff]  }
 0x4f6   :  { %v1295_v4 = vpop.f32.mrf.mxu0  ;;  %v1336_v5 = vpop.f32.mrf.mxu1  ;;  %v2743_v60 = vld [vmem:[#allocation8 + $0x48] ss:$16 sps:$4 sm:$0xff]   ;;  %v2752_v1 = vld [vmem:[#allocation8 + $0x20] ss:$16 sps:$4 sm:$0xff]  }
 0x4f7   :  { %v1354_v6 = vmul.f32 0.5, %v1350_v63  ;;  %v1351_v7 = vadd.f32 %v1347_v3, %v2436_v53  ;;  %v1353_v62 = vadd.f32 %v1349_v21, %v2443_v24  ;;  %v2749_v63 = vld [vmem:[#allocation8 + $0x2c] ss:$16 sps:$4 sm:$0xff]   ;;  %v2755_v3 = vld [vmem:[#allocation8 + $0x28] ss:$16 sps:$4 sm:$0xff]   ;;  %v2877_v21 = vld [vmem:[#allocation18_spill] sm:$0xff] }
 0x4f8   :  { %v1296_v8 = vpop.f32.mrf.mxu0  ;;  %v1337_v33 = vpop.f32.mrf.mxu1  ;;  %v2758_v4 = vld [vmem:[#allocation8 + $0x4] ss:$16 sps:$4 sm:$0xff]   ;;  %v2761_v5 = vld [vmem:[#allocation8 + $0xc] ss:$16 sps:$4 sm:$0xff]  }
 0x4f9   :  { %2032 = vtanh.f32 %v1354_v6  ;;  %v1358_v15 = vmul.f32 0.5, %v1351_v7  ;;  %v1363_v54 = vmul.f32 0.5, %v1353_v62  ;;  %v2764_v6 = vld [vmem:[#allocation8] ss:$16 sps:$4 sm:$0xff]   ;;  %v2767_v7 = vld [vmem:[#allocation8 + $0x8] ss:$16 sps:$4 sm:$0xff]   ;;  %v1468_v62 = vunpack.c.l.bf16 %v2877_v21 }
 0x4fa   :  { %v2876_v8 = vld [vmem:[#allocation17_spill] sm:$0xff] }
 0x4fb   :  { %2034 = vtanh.f32 %v1358_v15  ;;  %v1466_v33 = vunpack.c.l.bf16 %v2876_v8 }
 0x4fc   :  { %2036 = vtanh.f32 %v1352_v34 }
 0x4fd   :  { %2038 = vtanh.f32 %v1363_v54  ;;  %v1467_v54 = vunpack.c.h.bf16 %v2876_v8 }
 0x506   :  { %v2033_v17 = vpop.eup %2032 }
 0x507   :  { %v1356_v35 = vmul.f32 0.5, %v2033_v17 }
 0x508   :  { %v2035_v44 = vpop.eup %2034 }
 0x509   :  { %v1357_v10 = vadd.f32 0.5, %v1356_v35  ;;  %v1360_v25 = vmul.f32 0.5, %v2035_v44  ;;  %v2037_v29 = vpop.eup %2036 }
 0x50a   :  { %v2039_v23 = vpop.eup %2038 }
 0x50b   :  { %v1361_v31 = vadd.f32 0.5, %v1360_v25  ;;  %v1368_v20 = vmul.f32 %v2037_v29, %v1357_v10  ;;  %v1365_v22 = vmul.f32 0.5, %v2039_v23  ;;  %v1469_v23 = vunpack.c.h.bf16 %v2877_v21 }
 0x50d   :  { %v1367_v11 = vmul.f32 %v1361_v31, %v2616_v12  ;;  %v1366_v36 = vadd.f32 0.5, %v1365_v22 }
 0x50f   :  { %v1369_v57 = vadd.f32 %v1368_v20, %v1367_v11 }
 0x511   :  { %2040 = vtanh.f32 %v1369_v57  ;;  %v2691_v16 = vsel %vm1377_vm15, %v1369_v57, %v2616_v12  ;;  %v2710_v12 = vld [vmem:[#allocation8 + $0x84] ss:$16 sps:$4 sm:$0xff]  }
 0x51e   :  { %v2041_v37 = vpop.eup %2040 }
 0x51f   :  { %v1371_v38 = vmul.f32 %v2041_v37, %v1366_v36 }
 0x521   :  { %v2694_v39 = vsel %vm1377_vm15, %v1371_v38, %v2619_v41  ;;  %v2713_v41 = vld [vmem:[#allocation8 + $0x8c] ss:$16 sps:$4 sm:$0xff]  }
 0x522   :  { %v1380_v40 = vpack.c.bf16 %v2694_v39, %v2694_v39 }
 0x524   :  { %1414 = vmatmul.mubr.bf16.vlgmr.msra.gmra.mxu0 %v1380_v40  ;;  %1455 = vmatmul.mubr.bf16.vlgmr.msra.gmra.mxu1 %v1380_v40 }
 0x525   :  { %1506 = vmatpush1.bf16.msra.mxu0 %v2623_v43  ;;  %1547 = vmatpush1.bf16.msra.mxu1 %v2626_v45 }
 0x526   :  { %1507 = vmatprep.subr.bf16.mxu0 %v2629_v28  ;;  %1548 = vmatprep.subr.bf16.mxu1 %v2632_v46 }
 0x527   :  { %1537 = vmatprep.mubr.bf16.mxu0 %v2871_v32  ;;  %1578 = vmatprep.mubr.bf16.mxu1 %v2871_v32 }
 0x529   :  { %1508 = vmatpush1.bf16.msra.mxu0 %v2637_v19  ;;  %1549 = vmatpush1.bf16.msra.mxu1 %v2640_v14 }
 0x52a   :  { %1509 = vmatprep.subr.bf16.mxu0 %v2643_v0  ;;  %1550 = vmatprep.subr.bf16.mxu1 %v2646_v13 }
 0x52d   :  { %1510 = vmatpush1.bf16.msra.mxu0 %v2649_v9  ;;  %1551 = vmatpush1.bf16.msra.mxu1 %v2652_v27 }
 0x52e   :  { %1511 = vmatprep.subr.bf16.mxu0 %v2710_v12  ;;  %1552 = vmatprep.subr.bf16.mxu1 %v2713_v41 }
 0x531   :  { %1512 = vmatpush1.bf16.msra.mxu0 %v2716_v42  ;;  %1553 = vmatpush1.bf16.msra.mxu1 %v2719_v49 }
 0x532   :  { %1513 = vmatprep.subr.bf16.mxu0 %v2722_v50  ;;  %1554 = vmatprep.subr.bf16.mxu1 %v2725_v51 }
 0x535   :  { %1514 = vmatpush1.bf16.msra.mxu0 %v2728_v52  ;;  %1555 = vmatpush1.bf16.msra.mxu1 %v2731_v55 }
 0x536   :  { %1515 = vmatprep.subr.bf16.mxu0 %v2734_v56  ;;  %1556 = vmatprep.subr.bf16.mxu1 %v2737_v58 }
 0x539   :  { %1516 = vmatpush1.bf16.msra.mxu0 %v2740_v59  ;;  %1557 = vmatpush1.bf16.msra.mxu1 %v2743_v60 }
 0x53a   :  { %1517 = vmatprep.subr.bf16.mxu0 %v2746_v61  ;;  %1558 = vmatprep.subr.bf16.mxu1 %v2749_v63 }
 0x53d   :  { %1518 = vmatpush1.bf16.msra.mxu0 %v2752_v1  ;;  %1559 = vmatpush1.bf16.msra.mxu1 %v2755_v3 }
 0x53e   :  { %1519 = vmatprep.subr.bf16.mxu0 %v2758_v4  ;;  %1560 = vmatprep.subr.bf16.mxu1 %v2761_v5 }
 0x541   :  { %1520 = vmatpush1.bf16.msra.mxu0 %v2764_v6  ;;  %1561 = vmatpush1.bf16.msra.mxu1 %v2767_v7 }
 0x542   :  { %1629 = vmatprep.subr.bf16.mxu0 %v2675_v47  ;;  %1670 = vmatprep.subr.bf16.mxu1 %v2678_v48 }
 0x5e4   :  { %v1415_v34 = vpop.f32.mrf.mxu0  ;;  %v1456_v15 = vpop.f32.mrf.mxu1 }
 0x5e5   :  { %v1470_v26 = vadd.f32 %v1466_v33, %v1415_v34  ;;  %v1472_v10 = vadd.f32 %v1468_v62, %v1456_v15 }
 0x5e6   :  { %v1417_v17 = vpop.f32.mrf.mxu0  ;;  %v1458_v35 = vpop.f32.mrf.mxu1 }
 0x5e7   :  { %v1474_v44 = vadd.f32 %v1470_v26, %v2430_v18  ;;  %v1471_v25 = vadd.f32 %v1467_v54, %v1417_v17  ;;  %v1476_v30 = vadd.f32 %v1472_v10, %v2439_v2  ;;  %v1473_v22 = vadd.f32 %v1469_v23, %v1458_v35  ;;  %v1500_v17 = vpop.permute.xlu1 %1499 }
 0x5e8   :  { %v1419_v29 = vpop.f32.mrf.mxu0  ;;  %v1460_v31 = vpop.f32.mrf.mxu1  ;;  %vm1501_vm0 = vcmp.eq.s32.totalorder %v1500_v17, 1 }
 0x5e9   :  { %v1478_v47 = vmul.f32 0.5, %v1474_v44  ;;  %v1475_v48 = vadd.f32 %v1471_v25, %v2436_v53  ;;  %v1477_v36 = vadd.f32 %v1473_v22, %v2443_v24 }
 0x5ea   :  { %v1420_v20 = vpop.f32.mrf.mxu0  ;;  %v1461_v11 = vpop.f32.mrf.mxu1 }
 0x5eb   :  { %2042 = vtanh.f32 %v1478_v47  ;;  %v1482_v57 = vmul.f32 0.5, %v1475_v48  ;;  %v1487_v37 = vmul.f32 0.5, %v1477_v36  ;;  %v1624_v11 = vpop.permute.xlu0 %1623 }
 0x5ec   :  { %vm1625_vm1 = vcmp.eq.s32.totalorder %v1624_v11, 1 }
 0x5ed   :  { %2044 = vtanh.f32 %v1482_v57 }
 0x5ee   :  { %2046 = vtanh.f32 %v1476_v30 }
 0x5ef   :  { %2048 = vtanh.f32 %v1487_v37 }
 0x5f8   :  { %v2043_v38 = vpop.eup %2042 }
 0x5f9   :  { %v1480_v40 = vmul.f32 0.5, %v2043_v38 }
 0x5fa   :  { %v2045_v8 = vpop.eup %2044 }
 0x5fb   :  { %v1481_v33 = vadd.f32 0.5, %v1480_v40  ;;  %v1484_v34 = vmul.f32 0.5, %v2045_v8  ;;  %v2047_v15 = vpop.eup %2046 }
 0x5fc   :  { %v2049_v35 = vpop.eup %2048 }
 0x5fd   :  { %v1485_v26 = vadd.f32 0.5, %v1484_v34  ;;  %v1492_v62 = vmul.f32 %v2047_v15, %v1481_v33  ;;  %v1489_v10 = vmul.f32 0.5, %v2049_v35  ;;  %v2880_v33 = vld [vmem:[#allocation21_spill] sm:$0xff] }
 0x5fe   :  { %v1714_v34 = vunpack.c.l.bf16 %v2880_v33 }
 0x5ff   :  { %v1491_v54 = vmul.f32 %v1485_v26, %v2691_v16  ;;  %v1490_v25 = vadd.f32 0.5, %v1489_v10 }
 0x601   :  { %v1493_v44 = vadd.f32 %v1492_v62, %v1491_v54  ;;  %v2881_v54 = vld [vmem:[#allocation22_spill] sm:$0xff] }
 0x602   :  { %v1716_v17 = vunpack.c.l.bf16 %v2881_v54 }
 0x603   :  { %2050 = vtanh.f32 %v1493_v44  ;;  %v2782_v21 = vsel %vm1501_vm0, %v1493_v44, %v2691_v16  ;;  %v1715_v44 = vunpack.c.h.bf16 %v2880_v33 }
 0x610   :  { %v2051_v29 = vpop.eup %2050 }
 0x611   :  { %v1495_v31 = vmul.f32 %v2051_v29, %v1490_v25 }
 0x613   :  { %v2785_v47 = vsel %vm1501_vm0, %v1495_v31, %v2694_v39 }
 0x614   :  { %v1504_v48 = vpack.c.bf16 %v2785_v47, %v2785_v47 }
 0x616   :  { %1538 = vmatmul.mubr.bf16.vlgmr.msra.gmra.mxu0 %v1504_v48  ;;  %1579 = vmatmul.mubr.bf16.vlgmr.msra.gmra.mxu1 %v1504_v48 }
 0x617   :  { %1630 = vmatpush1.bf16.msra.mxu0 %v2623_v43  ;;  %1671 = vmatpush1.bf16.msra.mxu1 %v2626_v45 }
 0x618   :  { %1631 = vmatprep.subr.bf16.mxu0 %v2629_v28  ;;  %1672 = vmatprep.subr.bf16.mxu1 %v2632_v46 }
 0x619   :  { %1661 = vmatprep.mubr.bf16.mxu0 %v2871_v32  ;;  %1702 = vmatprep.mubr.bf16.mxu1 %v2871_v32  ;;  %v2878_v32 = vld [vmem:[#allocation19_spill] sm:$0xff] }
 0x61a   :  { %v1590_v43 = vunpack.c.l.bf16 %v2878_v32 }
 0x61b   :  { %1632 = vmatpush1.bf16.msra.mxu0 %v2637_v19  ;;  %1673 = vmatpush1.bf16.msra.mxu1 %v2640_v14  ;;  %v2879_v19 = vld [vmem:[#allocation20_spill] sm:$0xff] }
 0x61c   :  { %1633 = vmatprep.subr.bf16.mxu0 %v2643_v0  ;;  %1674 = vmatprep.subr.bf16.mxu1 %v2646_v13  ;;  %v1592_v14 = vunpack.c.l.bf16 %v2879_v19  ;;  %v1591_v0 = vunpack.c.h.bf16 %v2878_v32 }
 0x61f   :  { %1634 = vmatpush1.bf16.msra.mxu0 %v2649_v9  ;;  %1675 = vmatpush1.bf16.msra.mxu1 %v2652_v27 }
 0x620   :  { %1635 = vmatprep.subr.bf16.mxu0 %v2710_v12  ;;  %1676 = vmatprep.subr.bf16.mxu1 %v2713_v41 }
 0x623   :  { %1636 = vmatpush1.bf16.msra.mxu0 %v2716_v42  ;;  %1677 = vmatpush1.bf16.msra.mxu1 %v2719_v49 }
 0x624   :  { %1637 = vmatprep.subr.bf16.mxu0 %v2722_v50  ;;  %1678 = vmatprep.subr.bf16.mxu1 %v2725_v51 }
 0x627   :  { %1638 = vmatpush1.bf16.msra.mxu0 %v2728_v52  ;;  %1679 = vmatpush1.bf16.msra.mxu1 %v2731_v55 }
 0x628   :  { %1639 = vmatprep.subr.bf16.mxu0 %v2734_v56  ;;  %1680 = vmatprep.subr.bf16.mxu1 %v2737_v58  ;;  %v1593_v56 = vunpack.c.h.bf16 %v2879_v19  ;;  %v1717_v19 = vunpack.c.h.bf16 %v2881_v54 }
 0x62b   :  { %1640 = vmatpush1.bf16.msra.mxu0 %v2740_v59  ;;  %1681 = vmatpush1.bf16.msra.mxu1 %v2743_v60 }
 0x62c   :  { %1641 = vmatprep.subr.bf16.mxu0 %v2746_v61  ;;  %1682 = vmatprep.subr.bf16.mxu1 %v2749_v63 }
 0x62f   :  { %1642 = vmatpush1.bf16.msra.mxu0 %v2752_v1  ;;  %1683 = vmatpush1.bf16.msra.mxu1 %v2755_v3 }
 0x630   :  { %1643 = vmatprep.subr.bf16.mxu0 %v2758_v4  ;;  %1684 = vmatprep.subr.bf16.mxu1 %v2761_v5 }
 0x633   :  { %1644 = vmatpush1.bf16.msra.mxu0 %v2764_v6  ;;  %1685 = vmatpush1.bf16.msra.mxu1 %v2767_v7 }
 0x6d6   :  { %v1539_v45 = vpop.f32.mrf.mxu0  ;;  %v1580_v28 = vpop.f32.mrf.mxu1 }
 0x6d7   :  { %v1594_v46 = vadd.f32 %v1590_v43, %v1539_v45  ;;  %v1596_v16 = vadd.f32 %v1592_v14, %v1580_v28 }
 0x6d8   :  { %v1541_v13 = vpop.f32.mrf.mxu0  ;;  %v1582_v9 = vpop.f32.mrf.mxu1 }
 0x6d9   :  { %v1598_v27 = vadd.f32 %v1594_v46, %v2430_v18  ;;  %v1595_v39 = vadd.f32 %v1591_v0, %v1541_v13  ;;  %v1600_v52 = vadd.f32 %v1596_v16, %v2439_v2  ;;  %v1597_v58 = vadd.f32 %v1593_v56, %v1582_v9  ;;  %v1755_v56 = vpop.permute.xlu0 %1754 }
 0x6da   :  { %v1543_v12 = vpop.f32.mrf.mxu0  ;;  %v1584_v41 = vpop.f32.mrf.mxu1  ;;  %vm1756_vm3 = vcmp.eq.s32.totalorder %v1755_v56, 1 }
 0x6db   :  { %v1602_v42 = vmul.f32 0.5, %v1598_v27  ;;  %v1599_v49 = vadd.f32 %v1595_v39, %v2436_v53  ;;  %v1601_v59 = vadd.f32 %v1597_v58, %v2443_v24 }
 0x6dc   :  { %v1544_v50 = vpop.f32.mrf.mxu0  ;;  %v1585_v51 = vpop.f32.mrf.mxu1 }
 0x6dd   :  { %2052 = vtanh.f32 %v1602_v42  ;;  %v1606_v55 = vmul.f32 0.5, %v1599_v49  ;;  %v1611_v60 = vmul.f32 0.5, %v1601_v59  ;;  %v1748_v51 = vpop.permute.xlu1 %1747 }
 0x6de   :  { %vm1749_vm2 = vcmp.eq.s32.totalorder %v1748_v51, 1 }
 0x6df   :  { %2054 = vtanh.f32 %v1606_v55 }
 0x6e0   :  { %2056 = vtanh.f32 %v1600_v52 }
 0x6e1   :  { %2058 = vtanh.f32 %v1611_v60 }
 0x6ea   :  { %v2053_v61 = vpop.eup %2052 }
 0x6eb   :  { %v1604_v63 = vmul.f32 0.5, %v2053_v61 }
 0x6ec   :  { %v2055_v1 = vpop.eup %2054 }
 0x6ed   :  { %v1605_v3 = vadd.f32 0.5, %v1604_v63  ;;  %v1608_v4 = vmul.f32 0.5, %v2055_v1  ;;  %v2057_v5 = vpop.eup %2056 }
 0x6ee   :  { %v2059_v23 = vpop.eup %2058 }
 0x6ef   :  { %v1609_v6 = vadd.f32 0.5, %v1608_v4  ;;  %v1616_v7 = vmul.f32 %v2057_v5, %v1605_v3  ;;  %v1613_v22 = vmul.f32 0.5, %v2059_v23 }
 0x6f1   :  { %v1615_v20 = vmul.f32 %v1609_v6, %v2782_v21  ;;  %v1614_v36 = vadd.f32 0.5, %v1613_v22 }
 0x6f3   :  { %v1617_v30 = vadd.f32 %v1616_v7, %v1615_v20 }
 0x6f5   :  { %2060 = vtanh.f32 %v1617_v30  ;;  %v1627_v57 = vsel %vm1625_vm1, %v1617_v30, %v2782_v21 }
 0x702   :  { %v2061_v37 = vpop.eup %2060 }
 0x703   :  { %v1619_v38 = vmul.f32 %v2061_v37, %v1614_v36 }
 0x705   :  { %v1626_v40 = vsel %vm1625_vm1, %v1619_v38, %v2785_v47 }
 0x706   :  { %v1628_v8 = vpack.c.bf16 %v1626_v40, %v1626_v40 }
 0x708   :  { %1662 = vmatmul.mubr.bf16.vlgmr.msra.gmra.mxu0 %v1628_v8  ;;  %1703 = vmatmul.mubr.bf16.vlgmr.msra.gmra.mxu1 %v1628_v8 }
 0x7c8   :  { %v1663_v15 = vpop.f32.mrf.mxu0  ;;  %v1704_v26 = vpop.f32.mrf.mxu1 }
 0x7c9   :  { %v1718_v62 = vadd.f32 %v1714_v34, %v1663_v15  ;;  %v1720_v25 = vadd.f32 %v1716_v17, %v1704_v26 }
 0x7ca   :  { %v1665_v21 = vpop.f32.mrf.mxu0  ;;  %v1706_v35 = vpop.f32.mrf.mxu1 }
 0x7cb   :  { %v1722_v10 = vadd.f32 %v1718_v62, %v2430_v18  ;;  %v1719_v29 = vadd.f32 %v1715_v44, %v1665_v21  ;;  %v1724_v28 = vadd.f32 %v1720_v25, %v2439_v2  ;;  %v1721_v14 = vadd.f32 %v1717_v19, %v1706_v35 }
 0x7cc   :  { %v1667_v31 = vpop.f32.mrf.mxu0  ;;  %v1708_v47 = vpop.f32.mrf.mxu1 }
 0x7cd   :  { %v1726_v48 = vmul.f32 0.5, %v1722_v10  ;;  %v1723_v32 = vadd.f32 %v1719_v29, %v2436_v53  ;;  %v1725_v18 = vadd.f32 %v1721_v14, %v2443_v24 }
 0x7ce   :  { %v1668_v43 = vpop.f32.mrf.mxu0  ;;  %v1709_v45 = vpop.f32.mrf.mxu1 }
 0x7cf   :  { %2062 = vtanh.f32 %v1726_v48  ;;  %v1730_v46 = vmul.f32 0.5, %v1723_v32  ;;  %v1735_v0 = vmul.f32 0.5, %v1725_v18 }
 0x7d1   :  { %2064 = vtanh.f32 %v1730_v46 }
 0x7d2   :  { %2066 = vtanh.f32 %v1724_v28 }
 0x7d3   :  { %2068 = vtanh.f32 %v1735_v0 }
 0x7dc   :  { %v2063_v13 = vpop.eup %2062 }
 0x7dd   :  { %v1728_v9 = vmul.f32 0.5, %v2063_v13 }
 0x7de   :  { %v2065_v27 = vpop.eup %2064 }
 0x7df   :  { %v1729_v16 = vadd.f32 0.5, %v1728_v9  ;;  %v1732_v39 = vmul.f32 0.5, %v2065_v27  ;;  %v2067_v53 = vpop.eup %2066 }
 0x7e0   :  { %v2069_v49 = vpop.eup %2068 }
 0x7e1   :  { %v1733_v12 = vadd.f32 0.5, %v1732_v39  ;;  %v1740_v41 = vmul.f32 %v2067_v53, %v1729_v16  ;;  %v1737_v50 = vmul.f32 0.5, %v2069_v49 }
 0x7e3   :  { %v1739_v42 = vmul.f32 %v1733_v12, %v1627_v57  ;;  %v1738_v52 = vadd.f32 0.5, %v1737_v50 }
 0x7e5   :  { %v1741_v2 = vadd.f32 %v1740_v41, %v1739_v42 }
 0x7e7   :  { %2070 = vtanh.f32 %v1741_v2 }
 0x7f4   :  { %v2071_v55 = vpop.eup %2070 }
 0x7f5   :  { %v1743_v24 = vmul.f32 %v2071_v55, %v1738_v52 }
 0x7f7   :  { %v1750_v58 = vsel %vm1749_vm2, %v1743_v24, %v1626_v40 }
 0x7f8   :  { %v1757_v59 = vsel %vm1756_vm3, %v1750_v58, 0.0 }
 0x7f9   :  { %1758 = vst [vmem:[#allocation9] sm:$0xff] %v1757_v59 }
 0x7fa   :  { %2175 = shalt.err (!%p2172_p5)
}
 0x7fb   :  { %1768 = dma.vmem_to_hbm [thread:$0]  %s1766_s12, 128, %s2848_s5, [#allocation5]  }
 0x7fc   :  { %2188 = dma.done.wait [#allocation5], 128  }
 0x7fd   :  { %2189 = vsyncadd [#allocation5], 4294967168 }
 0x7fe   :  { %1772 = vsyncpa [#allocation4], 1 }
 0x7ff   :  { %1773 = vsyncpa [#allocation7], 1 }
 0x800   :  { %1774 = vsyncpa [#allocation5], 1 }

</bundles_post_ra>
